<compile_context>
chip_gen: v7x
topology: tpu7x:2x2x1
jax: 0.10.0
libtpu: 0.0.40
codegen_flags: <defaults>
</compile_context>

<pallas_src>
import functools
import math

import jax
import jax.numpy as jnp
from jax.experimental import pallas as pl
from jax.experimental.pallas import tpu as pltpu


# ----------------------------------------------------------------------------
# In-kernel helpers (pure jnp; lower to VPU / MXU / XLU / EUP ops)
# ----------------------------------------------------------------------------
_SQRT_2_OVER_PI = math.sqrt(2.0 / math.pi)


def _gelu_tanh(z):
    # tanh-approximation GELU: one EUP tanh instead of a ~10-op polynomial erf.
    return 0.5 * z * (1.0 + jnp.tanh(_SQRT_2_OVER_PI * (z + 0.044715 * z * z * z)))


def _softmax_tokens(z):
    # softmax over the token axis (axis 0) per channel -- matches q.softmax(-2)
    m = jnp.max(z, axis=0, keepdims=True)
    e = jnp.exp(z - m)
    return e * pl.reciprocal(jnp.sum(e, axis=0, keepdims=True), approx=True)


# ----------------------------------------------------------------------------
# Fused kernel: one grid step per batch element
# ----------------------------------------------------------------------------
def _cp_kernel(x_ref, wqf1_ref, avg_ref, w2_t_ref, convw_ref,
               vech_ref, vecc_ref, mask_ref, out_ref, *, W):
    x = x_ref[0].astype(jnp.float32)               # (N, C)
    N, C = x.shape

    # Packed per-channel vectors (cheap static sublane slices).
    b1       = vech_ref[0:1, :]
    cb1      = vech_ref[1:2, :]
    cb2      = vech_ref[2:3, :]
    gamma    = vech_ref[3:4, :]
    bn_scale = vech_ref[4:5, :]
    bn_shift = vech_ref[5:6, :]
    temp_c   = vecc_ref[0:1, :]
    b2       = vecc_ref[1:2, :]
    ln_w     = vecc_ref[2:3, :]
    ln_b     = vecc_ref[3:4, :]

    # Precomputed 0/1 edge masks for the 3x3 depthwise conv, (N, 1) each.
    cmask_m1 = mask_ref[:, 0:1]   # column w >= 1     (dj = -1 tap valid)
    cmask_p1 = mask_ref[:, 1:2]   # column w <= W-2   (dj = +1 tap valid)
    rmask_m1 = mask_ref[:, 2:3]   # row    h >= 1     (di = -1 tap valid)
    rmask_p1 = mask_ref[:, 3:4]   # row    h <= H-2   (di = +1 tap valid)

    # ---------------- fused q + fc1 projection (bf16 MXU, f32 accumulate) --
    x_mxu = x.astype(wqf1_ref.dtype)
    proj = jnp.dot(x_mxu, wqf1_ref[...], preferred_element_type=jnp.float32)  # (N, C+Hd)
    q = proj[:, :C]                                # q = Linear(dim, dim, bias=False)
    h1 = proj[:, C:] + b1                          # mlp_v.fc1              (N, Hd)

    # ---------------- channel attention: _gen_attn -------------------------
    sq = _softmax_tokens(q)
    sk = _softmax_tokens(x)
    # avg_ref is a (C, C) block-diagonal 1/head_dim matrix: per-head mean of
    # sk (adaptive_avg_pool2d to (N,1)) broadcast back to every head channel.
    kmc = jnp.dot(sk.astype(avg_ref.dtype), avg_ref[...],
                  preferred_element_type=jnp.float32)            # (N, C)
    logits = jnp.sum(sq * kmc, axis=0, keepdims=True)            # (1, C)
    # sigmoid via EUP exp + approx reciprocal, times temperature
    attn = pl.reciprocal(1.0 + jnp.exp(-logits), approx=True) * temp_c   # (1, C)

    # ---------------- mlp_v: DWConv(3x3) -> GELU -> BN -> DWConv(3x3) ------
    def tap(src, off):
        # tap(src, off)[n] == src[n + off]  (wrap-around killed by the masks)
        if off == 0:
            return src
        return pltpu.roll(src, shift=(-off) % N, axis=0)

    cw = convw_ref[...]                            # (18, Hd): rows 0..8 conv1, 9..17 conv2

    def dwconv3x3(flat, w_base, bias):
        # Column-shifted copies, column-edge mask applied once per dj group.
        cols = (tap(flat, -1) * cmask_m1, flat, tap(flat, 1) * cmask_p1)
        acc = None
        for di, rmask in ((-1, rmask_m1), (0, None), (1, rmask_p1)):
            g = None
            for jdx in range(3):                   # dj = jdx - 1
                widx = w_base + (di + 1) * 3 + jdx
                term = tap(cols[jdx], di * W) * cw[widx:widx + 1, :]
                g = term if g is None else g + term
            if rmask is not None:                  # row-edge mask once per di group
                g = g * rmask
            acc = g if acc is None else acc + g
        return acc + bias

    c1 = dwconv3x3(h1, 0, cb1)
    a = _gelu_tanh(c1)
    a = a * bn_scale + bn_shift                    # BatchNorm2d (eval) folded
    c2 = dwconv3x3(a, 9, cb2)

    h2 = gamma * c2 + h1                           # gamma * dwconv(x) + x
    y = jnp.dot(h2.astype(w2_t_ref.dtype), w2_t_ref[...],
                preferred_element_type=jnp.float32) + b2         # mlp_v.fc2, (N, C)

    # norm_v = LayerNorm over the channel dim
    mu = jnp.mean(y, axis=-1, keepdims=True)
    var = jnp.mean(jnp.square(y - mu), axis=-1, keepdims=True)
    v_out = (y - mu) * jax.lax.rsqrt(var + 1e-5) * ln_w + ln_b

    # final: (attn * v^T) flattened back to (N, C)
    out_ref[0] = (attn * v_out).astype(out_ref.dtype)


# ----------------------------------------------------------------------------
# Wrapper: host-side packing + pallas_call
# ----------------------------------------------------------------------------
def channel_processing_forward(x, params, H, W, num_heads):
    """Returns (x_out (B,N,C), out2 (B,h,N,d)) -- same as the PyTorch forward."""
    B, N, C = x.shape
    d = C // num_heads
    hidden = params["w1_t"].shape[1]
    mxu_dtype = jnp.bfloat16   # MXU operands only; elementwise stays f32 (v5e-safe)

    # fused q + fc1 weight, bf16 MXU weights
    wqf1 = jnp.concatenate([params["wq_t"], params["w1_t"]], axis=1).astype(mxu_dtype)
    avg_m = params["avgmat"].astype(mxu_dtype)
    w2_t = params["w2_t"].astype(mxu_dtype)
    # packed conv weights + small per-channel vectors (fewer DMAs / BlockSpecs)
    conv_w = jnp.concatenate([params["cw1"], params["cw2"]], axis=0)            # (18, hidden)
    vec_h = jnp.concatenate([params["b1"], params["cb1"], params["cb2"],
                             params["gamma"], params["bn_scale"],
                             params["bn_shift"]], axis=0)                        # (6, hidden)
    vec_c = jnp.concatenate([params["temp_c"], params["b2"],
                             params["ln_w"], params["ln_b"]], axis=0)            # (4, C)
    # 0/1 edge masks for the 3x3 depthwise conv (computed once on host)
    idx = jnp.arange(N, dtype=jnp.int32)
    wcol, hrow = idx % W, idx // W
    masks = jnp.stack([wcol >= 1, wcol <= W - 2, hrow >= 1, hrow <= H - 2],
                      axis=1).astype(jnp.float32)                                # (N, 4)

    weight_arrays = [wqf1, avg_m, w2_t, conv_w, vec_h, vec_c, masks]
    in_specs = [pl.BlockSpec((1, N, C), lambda b: (b, 0, 0))]
    in_specs += [pl.BlockSpec(w.shape, lambda b: (0, 0)) for w in weight_arrays]

    cost = pl.CostEstimate(
        flops=int(2 * B * N * (C * (C + hidden) + C * C + hidden * C)
                  + 2 * 2 * 9 * B * N * hidden),
        transcendentals=int(B * (2 * N * C + N * hidden + N + 2 * C)),
        bytes_accessed=int(2 * B * N * C * 4
                           + sum(int(w.size) * w.dtype.itemsize for w in weight_arrays)),
    )

    out = pl.pallas_call(
        functools.partial(_cp_kernel, W=W),
        out_shape=jax.ShapeDtypeStruct((B, N, C), x.dtype),
        grid=(B,),
        in_specs=in_specs,
        out_specs=pl.BlockSpec((1, N, C), lambda b: (b, 0, 0)),
        compiler_params=pltpu.CompilerParams(
            dimension_semantics=("parallel",)),   # batch steps are independent
        cost_estimate=cost,
    )(x, *weight_arrays)

    # second return value of the PyTorch forward: (attn * v^T).transpose(-1,-2)
    # kept in XLA (producing it in-kernel would force a d-wide masked store).
    out2 = out.reshape(B, N, num_heads, d).transpose(0, 2, 1, 3)
    return out, out2


# ----------------------------------------------------------------------------
# Deterministic parameter construction (shapes from ChannelProcessing.__init__)
# ----------------------------------------------------------------------------
def init_params(key, C, num_heads, hidden):
    d = C // num_heads
    ks = jax.random.split(key, 12)
    wq = 0.02 * jax.random.normal(ks[0], (C, C), jnp.float32)        # q: Linear(dim, dim, bias=False)
    w1 = 0.02 * jax.random.normal(ks[1], (hidden, C), jnp.float32)   # mlp_v.fc1
    w2 = 0.02 * jax.random.normal(ks[2], (C, hidden), jnp.float32)   # mlp_v.fc2
    cw1 = math.sqrt(2.0 / 9.0) * jax.random.normal(ks[3], (9, hidden), jnp.float32)  # dw conv1 (hidden,1,3,3)
    cw2 = math.sqrt(2.0 / 9.0) * jax.random.normal(ks[4], (9, hidden), jnp.float32)  # dw conv2
    # Non-trivial (but deterministic) values so every broadcast path is
    # exercised (the module inits most of these to 1s/0s).
    temperature = 1.0 + 0.1 * jnp.arange(num_heads, dtype=jnp.float32)               # (num_heads,1,1)
    b1 = 0.01 * jax.random.normal(ks[5], (1, hidden), jnp.float32)
    cb1 = 0.01 * jax.random.normal(ks[6], (1, hidden), jnp.float32)
    cb2 = 0.01 * jax.random.normal(ks[7], (1, hidden), jnp.float32)
    b2 = 0.01 * jax.random.normal(ks[8], (1, C), jnp.float32)
    gamma = 1.0 + 0.05 * jax.random.normal(ks[9], (1, hidden), jnp.float32)
    ln_w = 1.0 + 0.05 * jax.random.normal(ks[10], (1, C), jnp.float32)
    ln_b = 0.01 * jax.random.normal(ks[11], (1, C), jnp.float32)
    # BatchNorm2d (eval mode): running_mean=0, running_var=1, weight=1, bias=0
    bn_eps = 1e-5
    bn_scale = jnp.full((1, hidden), 1.0 / math.sqrt(1.0 + bn_eps), jnp.float32)
    bn_shift = jnp.zeros((1, hidden), jnp.float32)
    # per-head averaging matrix (adaptive_avg_pool2d over head_dim) broadcast
    head_of = jnp.arange(C) // d
    avgmat = (head_of[:, None] == head_of[None, :]).astype(jnp.float32) / d

    return dict(
        wq_t=wq.T, avgmat=avgmat,
        temperature=temperature,
        temp_c=jnp.repeat(temperature, d).reshape(1, C),
        w1_t=w1.T, b1=b1, cw1=cw1, cb1=cb1,
        bn_scale=bn_scale, bn_shift=bn_shift,
        cw2=cw2, cb2=cb2, gamma=gamma,
        w2_t=w2.T, b2=b2, ln_w=ln_w, ln_b=ln_b,
    )


# ----------------------------------------------------------------------------
# Pure-JAX reference (mirrors the PyTorch forward op-for-op) for validation
# ----------------------------------------------------------------------------
def _dwconv_ref(img_nhwc, w9, b):
    Hd = img_nhwc.shape[-1]
    k = w9.reshape(3, 3, 1, Hd)
    out = jax.lax.conv_general_dilated(
        img_nhwc, k, window_strides=(1, 1), padding="SAME",
        dimension_numbers=("NHWC", "HWIO", "NHWC"),
        feature_group_count=Hd, precision=jax.lax.Precision.HIGHEST)
    return out + b.reshape(1, 1, 1, Hd)


def reference_forward(x, p, H, W, num_heads):
    B, N, C = x.shape
    d = C // num_heads
    hp = jax.lax.Precision.HIGHEST
    q = jnp.dot(x, p["wq_t"], precision=hp)
    qh = q.reshape(B, N, num_heads, d).transpose(0, 2, 1, 3)     # (B,h,N,d)
    kh = x.reshape(B, N, num_heads, d).transpose(0, 2, 1, 3)
    sq = jax.nn.softmax(qh, axis=2)
    sk = jax.nn.softmax(kh, axis=2)
    km = jnp.mean(sk, axis=3, keepdims=True)                      # adaptive_avg_pool2d -> (B,h,N,1)
    attn = jax.nn.sigmoid(jnp.matmul(jnp.swapaxes(sq, -1, -2), km))   # (B,h,d,1)
    attn = attn * p["temperature"].reshape(1, num_heads, 1, 1)

    h1 = jnp.dot(x, p["w1_t"], precision=hp) + p["b1"]
    Hd = h1.shape[-1]
    img = h1.reshape(B, H, W, Hd)
    c1 = _dwconv_ref(img, p["cw1"], p["cb1"][0])
    a = jax.nn.gelu(c1, approximate=False)
    a = a * p["bn_scale"].reshape(1, 1, 1, Hd) + p["bn_shift"].reshape(1, 1, 1, Hd)
    c2 = _dwconv_ref(a, p["cw2"], p["cb2"][0])
    dwf = c2.reshape(B, N, Hd)
    h2 = p["gamma"] * dwf + h1
    y = jnp.dot(h2, p["w2_t"], precision=hp) + p["b2"]
    mu = y.mean(-1, keepdims=True)
    var = ((y - mu) ** 2).mean(-1, keepdims=True)
    v_out = (y - mu) / jnp.sqrt(var + 1e-5) * p["ln_w"] + p["ln_b"]

    vh = v_out.reshape(B, N, num_heads, d).transpose(0, 2, 1, 3)  # (B,h,N,d)
    prod = attn * jnp.swapaxes(vh, -1, -2)                        # (B,h,d,N)
    out = prod.transpose(0, 3, 1, 2).reshape(B, N, C)
    out2 = jnp.swapaxes(prod, -1, -2)
    return out, out2


# ----------------------------------------------------------------------------
if __name__ == "__main__":
    B, H, W = 2, 8, 8
    N = H * W
    C = 32            # dim
    num_heads = 8
    hidden = 64       # mlp_hidden_dim

    key = jax.random.PRNGKey(0)
    kx, kp = jax.random.split(key)
    x = jax.random.normal(kx, (B, N, C), jnp.float32)
    params = init_params(kp, C, num_heads, hidden)

    out, out2 = channel_processing_forward(x, params, H, W, num_heads)
    jax.block_until_ready(out)
    jax.block_until_ready(out2)

    ref_out, ref_out2 = reference_forward(x, params, H, W, num_heads)
    assert out.shape == (B, N, C) and out2.shape == (B, num_heads, N, C // num_heads)
    max_err = float(jnp.max(jnp.abs(out - ref_out)))
    assert jnp.allclose(out, ref_out, atol=5e-2, rtol=5e-2), max_err
    assert jnp.allclose(out2, ref_out2, atol=5e-2, rtol=5e-2)

    print("KERNEL_OK")
</pallas_src>

<mosaic_0001>
module attributes {stable_mosaic.version = 11 : i64} {
  func.func @_cp_kernel(%arg0: i32, %arg1: memref<1x64x32xf32, #tpu.memory_space<vmem>>, %arg2: memref<32x96xbf16, #tpu.memory_space<vmem>>, %arg3: memref<32x32xbf16, #tpu.memory_space<vmem>>, %arg4: memref<64x32xbf16, #tpu.memory_space<vmem>>, %arg5: memref<18x64xf32, #tpu.memory_space<vmem>>, %arg6: memref<6x64xf32, #tpu.memory_space<vmem>>, %arg7: memref<4x32xf32, #tpu.memory_space<vmem>>, %arg8: memref<64x4xf32, #tpu.memory_space<vmem>>, %arg9: memref<1x64x32xf32, #tpu.memory_space<vmem>>) attributes {dimension_semantics = [#tpu.dimension_semantics<parallel>], iteration_bounds = array<i64: 2>, scalar_prefetch = 0 : i64, scratch_operands = 0 : i64, tpu.core_type = #tpu.core_type<tc>, window_params = [{transform_indices = @transform_0, window_bounds = array<i64: 1, 64, 32>}, {pipeline_mode = #tpu.pipeline_mode<synchronous>, transform_indices = @transform_1, window_bounds = array<i64: 32, 96>}, {pipeline_mode = #tpu.pipeline_mode<synchronous>, transform_indices = @transform_2, window_bounds = array<i64: 32, 32>}, {pipeline_mode = #tpu.pipeline_mode<synchronous>, transform_indices = @transform_3, window_bounds = array<i64: 64, 32>}, {pipeline_mode = #tpu.pipeline_mode<synchronous>, transform_indices = @transform_4, window_bounds = array<i64: 18, 64>}, {pipeline_mode = #tpu.pipeline_mode<synchronous>, transform_indices = @transform_5, window_bounds = array<i64: 6, 64>}, {pipeline_mode = #tpu.pipeline_mode<synchronous>, transform_indices = @transform_6, window_bounds = array<i64: 4, 32>}, {pipeline_mode = #tpu.pipeline_mode<synchronous>, transform_indices = @transform_7, window_bounds = array<i64: 64, 4>}, {transform_indices = @transform_8, window_bounds = array<i64: 1, 64, 32>}]} {
    %c0 = arith.constant 0 : index
    %c0_0 = arith.constant 0 : index
    %c0_1 = arith.constant 0 : index
    %0 = vector.load %arg1[%c0, %c0_0, %c0_1] : memref<1x64x32xf32, #tpu.memory_space<vmem>>, vector<1x64x32xf32>
    %1 = vector.shape_cast %0 : vector<1x64x32xf32> to vector<64x32xf32>
    %c0_2 = arith.constant 0 : index
    %c0_3 = arith.constant 0 : index
    %2 = vector.load %arg6[%c0_2, %c0_3] : memref<6x64xf32, #tpu.memory_space<vmem>>, vector<1x64xf32>
    %c1 = arith.constant 1 : index
    %c0_4 = arith.constant 0 : index
    %3 = vector.load %arg6[%c1, %c0_4] : memref<6x64xf32, #tpu.memory_space<vmem>>, vector<1x64xf32>
    %c2 = arith.constant 2 : index
    %c0_5 = arith.constant 0 : index
    %4 = vector.load %arg6[%c2, %c0_5] : memref<6x64xf32, #tpu.memory_space<vmem>>, vector<1x64xf32>
    %c3 = arith.constant 3 : index
    %c0_6 = arith.constant 0 : index
    %5 = vector.load %arg6[%c3, %c0_6] : memref<6x64xf32, #tpu.memory_space<vmem>>, vector<1x64xf32>
    %c4 = arith.constant 4 : index
    %c0_7 = arith.constant 0 : index
    %6 = vector.load %arg6[%c4, %c0_7] : memref<6x64xf32, #tpu.memory_space<vmem>>, vector<1x64xf32>
    %c5 = arith.constant 5 : index
    %c0_8 = arith.constant 0 : index
    %7 = vector.load %arg6[%c5, %c0_8] : memref<6x64xf32, #tpu.memory_space<vmem>>, vector<1x64xf32>
    %c0_9 = arith.constant 0 : index
    %c0_10 = arith.constant 0 : index
    %8 = vector.load %arg7[%c0_9, %c0_10] : memref<4x32xf32, #tpu.memory_space<vmem>>, vector<1x32xf32>
    %c1_11 = arith.constant 1 : index
    %c0_12 = arith.constant 0 : index
    %9 = vector.load %arg7[%c1_11, %c0_12] : memref<4x32xf32, #tpu.memory_space<vmem>>, vector<1x32xf32>
    %c2_13 = arith.constant 2 : index
    %c0_14 = arith.constant 0 : index
    %10 = vector.load %arg7[%c2_13, %c0_14] : memref<4x32xf32, #tpu.memory_space<vmem>>, vector<1x32xf32>
    %c3_15 = arith.constant 3 : index
    %c0_16 = arith.constant 0 : index
    %11 = vector.load %arg7[%c3_15, %c0_16] : memref<4x32xf32, #tpu.memory_space<vmem>>, vector<1x32xf32>
    %c0_17 = arith.constant 0 : index
    %c0_18 = arith.constant 0 : index
    %12 = vector.load %arg8[%c0_17, %c0_18] : memref<64x4xf32, #tpu.memory_space<vmem>>, vector<64x1xf32>
    %c0_19 = arith.constant 0 : index
    %c1_20 = arith.constant 1 : index
    %13 = vector.load %arg8[%c0_19, %c1_20] : memref<64x4xf32, #tpu.memory_space<vmem>>, vector<64x1xf32>
    %c0_21 = arith.constant 0 : index
    %c2_22 = arith.constant 2 : index
    %14 = vector.load %arg8[%c0_21, %c2_22] : memref<64x4xf32, #tpu.memory_space<vmem>>, vector<64x1xf32>
    %c0_23 = arith.constant 0 : index
    %c3_24 = arith.constant 3 : index
    %15 = vector.load %arg8[%c0_23, %c3_24] : memref<64x4xf32, #tpu.memory_space<vmem>>, vector<64x1xf32>
    %16 = arith.truncf %1 : vector<64x32xf32> to vector<64x32xbf16>
    %c0_25 = arith.constant 0 : index
    %c0_26 = arith.constant 0 : index
    %17 = vector.load %arg2[%c0_25, %c0_26] : memref<32x96xbf16, #tpu.memory_space<vmem>>, vector<32x96xbf16>
    %cst = arith.constant dense<0.000000e+00> : vector<64x96xf32>
    %18 = tpu.matmul %16, %17, %cst {dimension_numbers = #tpu.dot_dimension_numbers<[1], [0], [0], [1], [0, 0, 1, 1], [], []>} : vector<64x32xbf16>, vector<32x96xbf16>, vector<64x96xf32> -> vector<64x96xf32>
    %19 = vector.extract_strided_slice %18 {offsets = [0, 0], sizes = [64, 32], strides = [1, 1]} : vector<64x96xf32> to vector<64x32xf32>
    %20 = vector.extract_strided_slice %18 {offsets = [0, 32], sizes = [64, 64], strides = [1, 1]} : vector<64x96xf32> to vector<64x64xf32>
    %21 = vector.broadcast %2 : vector<1x64xf32> to vector<64x64xf32>
    %22 = arith.addf %20, %21 : vector<64x64xf32>
    %cst_27 = arith.constant dense<0xFF800000> : vector<32xf32>
    %23 = vector.multi_reduction <maximumf>, %19, %cst_27 [0] : vector<64x32xf32> to vector<32xf32>
    %24 = vector.shape_cast %23 : vector<32xf32> to vector<1x32xf32>
    %25 = vector.broadcast %24 : vector<1x32xf32> to vector<64x32xf32>
    %26 = arith.subf %19, %25 : vector<64x32xf32>
    %27 = math.exp %26 : vector<64x32xf32>
    %cst_28 = arith.constant dense<0.000000e+00> : vector<32xf32>
    %28 = vector.multi_reduction <add>, %27, %cst_28 [0] : vector<64x32xf32> to vector<32xf32>
    %29 = vector.shape_cast %28 : vector<32xf32> to vector<1x32xf32>
    %30 = tpu.reciprocal %29 {approx = true} : vector<1x32xf32> -> vector<1x32xf32>
    %31 = vector.broadcast %30 : vector<1x32xf32> to vector<64x32xf32>
    %32 = arith.mulf %27, %31 : vector<64x32xf32>
    %cst_29 = arith.constant dense<0xFF800000> : vector<32xf32>
    %33 = vector.multi_reduction <maximumf>, %1, %cst_29 [0] : vector<64x32xf32> to vector<32xf32>
    %34 = vector.shape_cast %33 : vector<32xf32> to vector<1x32xf32>
    %35 = vector.broadcast %34 : vector<1x32xf32> to vector<64x32xf32>
    %36 = arith.subf %1, %35 : vector<64x32xf32>
    %37 = math.exp %36 : vector<64x32xf32>
    %cst_30 = arith.constant dense<0.000000e+00> : vector<32xf32>
    %38 = vector.multi_reduction <add>, %37, %cst_30 [0] : vector<64x32xf32> to vector<32xf32>
    %39 = vector.shape_cast %38 : vector<32xf32> to vector<1x32xf32>
    %40 = tpu.reciprocal %39 {approx = true} : vector<1x32xf32> -> vector<1x32xf32>
    %41 = vector.broadcast %40 : vector<1x32xf32> to vector<64x32xf32>
    %42 = arith.mulf %37, %41 : vector<64x32xf32>
    %43 = arith.truncf %42 : vector<64x32xf32> to vector<64x32xbf16>
    %c0_31 = arith.constant 0 : index
    %c0_32 = arith.constant 0 : index
    %44 = vector.load %arg3[%c0_31, %c0_32] : memref<32x32xbf16, #tpu.memory_space<vmem>>, vector<32x32xbf16>
    %cst_33 = arith.constant dense<0.000000e+00> : vector<64x32xf32>
    %45 = tpu.matmul %43, %44, %cst_33 {dimension_numbers = #tpu.dot_dimension_numbers<[1], [0], [0], [1], [0, 0, 1, 1], [], []>} : vector<64x32xbf16>, vector<32x32xbf16>, vector<64x32xf32> -> vector<64x32xf32>
    %46 = arith.mulf %32, %45 : vector<64x32xf32>
    %cst_34 = arith.constant dense<0.000000e+00> : vector<32xf32>
    %47 = vector.multi_reduction <add>, %46, %cst_34 [0] : vector<64x32xf32> to vector<32xf32>
    %48 = vector.shape_cast %47 : vector<32xf32> to vector<1x32xf32>
    %cst_35 = arith.constant 0.000000e+00 : f32
    %49 = vector.broadcast %cst_35 : f32 to vector<1x32xf32>
    %50 = arith.subf %49, %48 : vector<1x32xf32>
    %51 = math.exp %50 : vector<1x32xf32>
    %cst_36 = arith.constant 1.000000e+00 : f32
    %52 = vector.broadcast %cst_36 : f32 to vector<1x32xf32>
    %53 = arith.addf %52, %51 : vector<1x32xf32>
    %54 = tpu.reciprocal %53 {approx = true} : vector<1x32xf32> -> vector<1x32xf32>
    %55 = arith.mulf %54, %8 : vector<1x32xf32>
    %c0_37 = arith.constant 0 : index
    %c0_38 = arith.constant 0 : index
    %56 = vector.load %arg5[%c0_37, %c0_38] : memref<18x64xf32, #tpu.memory_space<vmem>>, vector<18x64xf32>
    %c1_i32 = arith.constant 1 : i32
    %57 = tpu.dynamic_rotate %22 by %c1_i32 dim 0 : vector<64x64xf32>, i32 -> vector<64x64xf32>
    %58 = vector.broadcast %12 : vector<64x1xf32> to vector<64x64xf32>
    %59 = arith.mulf %57, %58 : vector<64x64xf32>
    %c63_i32 = arith.constant 63 : i32
    %60 = tpu.dynamic_rotate %22 by %c63_i32 dim 0 : vector<64x64xf32>, i32 -> vector<64x64xf32>
    %61 = vector.broadcast %13 : vector<64x1xf32> to vector<64x64xf32>
    %62 = arith.mulf %60, %61 : vector<64x64xf32>
    %c8_i32 = arith.constant 8 : i32
    %63 = tpu.dynamic_rotate %59 by %c8_i32 dim 0 : vector<64x64xf32>, i32 -> vector<64x64xf32>
    %64 = vector.extract_strided_slice %56 {offsets = [0, 0], sizes = [1, 64], strides = [1, 1]} : vector<18x64xf32> to vector<1x64xf32>
    %65 = vector.broadcast %64 : vector<1x64xf32> to vector<64x64xf32>
    %66 = arith.mulf %63, %65 : vector<64x64xf32>
    %c8_i32_39 = arith.constant 8 : i32
    %67 = tpu.dynamic_rotate %22 by %c8_i32_39 dim 0 : vector<64x64xf32>, i32 -> vector<64x64xf32>
    %68 = vector.extract_strided_slice %56 {offsets = [1, 0], sizes = [1, 64], strides = [1, 1]} : vector<18x64xf32> to vector<1x64xf32>
    %69 = vector.broadcast %68 : vector<1x64xf32> to vector<64x64xf32>
    %70 = arith.mulf %67, %69 : vector<64x64xf32>
    %71 = arith.addf %66, %70 : vector<64x64xf32>
    %c8_i32_40 = arith.constant 8 : i32
    %72 = tpu.dynamic_rotate %62 by %c8_i32_40 dim 0 : vector<64x64xf32>, i32 -> vector<64x64xf32>
    %73 = vector.extract_strided_slice %56 {offsets = [2, 0], sizes = [1, 64], strides = [1, 1]} : vector<18x64xf32> to vector<1x64xf32>
    %74 = vector.broadcast %73 : vector<1x64xf32> to vector<64x64xf32>
    %75 = arith.mulf %72, %74 : vector<64x64xf32>
    %76 = arith.addf %71, %75 : vector<64x64xf32>
    %77 = vector.broadcast %14 : vector<64x1xf32> to vector<64x64xf32>
    %78 = arith.mulf %76, %77 : vector<64x64xf32>
    %79 = vector.extract_strided_slice %56 {offsets = [3, 0], sizes = [1, 64], strides = [1, 1]} : vector<18x64xf32> to vector<1x64xf32>
    %80 = vector.broadcast %79 : vector<1x64xf32> to vector<64x64xf32>
    %81 = arith.mulf %59, %80 : vector<64x64xf32>
    %82 = vector.extract_strided_slice %56 {offsets = [4, 0], sizes = [1, 64], strides = [1, 1]} : vector<18x64xf32> to vector<1x64xf32>
    %83 = vector.broadcast %82 : vector<1x64xf32> to vector<64x64xf32>
    %84 = arith.mulf %22, %83 : vector<64x64xf32>
    %85 = arith.addf %81, %84 : vector<64x64xf32>
    %86 = vector.extract_strided_slice %56 {offsets = [5, 0], sizes = [1, 64], strides = [1, 1]} : vector<18x64xf32> to vector<1x64xf32>
    %87 = vector.broadcast %86 : vector<1x64xf32> to vector<64x64xf32>
    %88 = arith.mulf %62, %87 : vector<64x64xf32>
    %89 = arith.addf %85, %88 : vector<64x64xf32>
    %90 = arith.addf %78, %89 : vector<64x64xf32>
    %c56_i32 = arith.constant 56 : i32
    %91 = tpu.dynamic_rotate %59 by %c56_i32 dim 0 : vector<64x64xf32>, i32 -> vector<64x64xf32>
    %92 = vector.extract_strided_slice %56 {offsets = [6, 0], sizes = [1, 64], strides = [1, 1]} : vector<18x64xf32> to vector<1x64xf32>
    %93 = vector.broadcast %92 : vector<1x64xf32> to vector<64x64xf32>
    %94 = arith.mulf %91, %93 : vector<64x64xf32>
    %c56_i32_41 = arith.constant 56 : i32
    %95 = tpu.dynamic_rotate %22 by %c56_i32_41 dim 0 : vector<64x64xf32>, i32 -> vector<64x64xf32>
    %96 = vector.extract_strided_slice %56 {offsets = [7, 0], sizes = [1, 64], strides = [1, 1]} : vector<18x64xf32> to vector<1x64xf32>
    %97 = vector.broadcast %96 : vector<1x64xf32> to vector<64x64xf32>
    %98 = arith.mulf %95, %97 : vector<64x64xf32>
    %99 = arith.addf %94, %98 : vector<64x64xf32>
    %c56_i32_42 = arith.constant 56 : i32
    %100 = tpu.dynamic_rotate %62 by %c56_i32_42 dim 0 : vector<64x64xf32>, i32 -> vector<64x64xf32>
    %101 = vector.extract_strided_slice %56 {offsets = [8, 0], sizes = [1, 64], strides = [1, 1]} : vector<18x64xf32> to vector<1x64xf32>
    %102 = vector.broadcast %101 : vector<1x64xf32> to vector<64x64xf32>
    %103 = arith.mulf %100, %102 : vector<64x64xf32>
    %104 = arith.addf %99, %103 : vector<64x64xf32>
    %105 = vector.broadcast %15 : vector<64x1xf32> to vector<64x64xf32>
    %106 = arith.mulf %104, %105 : vector<64x64xf32>
    %107 = arith.addf %90, %106 : vector<64x64xf32>
    %108 = vector.broadcast %3 : vector<1x64xf32> to vector<64x64xf32>
    %109 = arith.addf %107, %108 : vector<64x64xf32>
    %cst_43 = arith.constant 5.000000e-01 : f32
    %110 = vector.broadcast %cst_43 : f32 to vector<64x64xf32>
    %111 = arith.mulf %110, %109 : vector<64x64xf32>
    %cst_44 = arith.constant 4.471500e-02 : f32
    %112 = vector.broadcast %cst_44 : f32 to vector<64x64xf32>
    %113 = arith.mulf %112, %109 : vector<64x64xf32>
    %114 = arith.mulf %113, %109 : vector<64x64xf32>
    %115 = arith.mulf %114, %109 : vector<64x64xf32>
    %116 = arith.addf %109, %115 : vector<64x64xf32>
    %cst_45 = arith.constant 0.797884583 : f32
    %117 = vector.broadcast %cst_45 : f32 to vector<64x64xf32>
    %118 = arith.mulf %117, %116 : vector<64x64xf32>
    %119 = math.tanh %118 : vector<64x64xf32>
    %cst_46 = arith.constant 1.000000e+00 : f32
    %120 = vector.broadcast %cst_46 : f32 to vector<64x64xf32>
    %121 = arith.addf %120, %119 : vector<64x64xf32>
    %122 = arith.mulf %111, %121 : vector<64x64xf32>
    %123 = vector.broadcast %6 : vector<1x64xf32> to vector<64x64xf32>
    %124 = arith.mulf %122, %123 : vector<64x64xf32>
    %125 = vector.broadcast %7 : vector<1x64xf32> to vector<64x64xf32>
    %126 = arith.addf %124, %125 : vector<64x64xf32>
    %c1_i32_47 = arith.constant 1 : i32
    %127 = tpu.dynamic_rotate %126 by %c1_i32_47 dim 0 : vector<64x64xf32>, i32 -> vector<64x64xf32>
    %128 = vector.broadcast %12 : vector<64x1xf32> to vector<64x64xf32>
    %129 = arith.mulf %127, %128 : vector<64x64xf32>
    %c63_i32_48 = arith.constant 63 : i32
    %130 = tpu.dynamic_rotate %126 by %c63_i32_48 dim 0 : vector<64x64xf32>, i32 -> vector<64x64xf32>
    %131 = vector.broadcast %13 : vector<64x1xf32> to vector<64x64xf32>
    %132 = arith.mulf %130, %131 : vector<64x64xf32>
    %c8_i32_49 = arith.constant 8 : i32
    %133 = tpu.dynamic_rotate %129 by %c8_i32_49 dim 0 : vector<64x64xf32>, i32 -> vector<64x64xf32>
    %134 = vector.extract_strided_slice %56 {offsets = [9, 0], sizes = [1, 64], strides = [1, 1]} : vector<18x64xf32> to vector<1x64xf32>
    %135 = vector.broadcast %134 : vector<1x64xf32> to vector<64x64xf32>
    %136 = arith.mulf %133, %135 : vector<64x64xf32>
    %c8_i32_50 = arith.constant 8 : i32
    %137 = tpu.dynamic_rotate %126 by %c8_i32_50 dim 0 : vector<64x64xf32>, i32 -> vector<64x64xf32>
    %138 = vector.extract_strided_slice %56 {offsets = [10, 0], sizes = [1, 64], strides = [1, 1]} : vector<18x64xf32> to vector<1x64xf32>
    %139 = vector.broadcast %138 : vector<1x64xf32> to vector<64x64xf32>
    %140 = arith.mulf %137, %139 : vector<64x64xf32>
    %141 = arith.addf %136, %140 : vector<64x64xf32>
    %c8_i32_51 = arith.constant 8 : i32
    %142 = tpu.dynamic_rotate %132 by %c8_i32_51 dim 0 : vector<64x64xf32>, i32 -> vector<64x64xf32>
    %143 = vector.extract_strided_slice %56 {offsets = [11, 0], sizes = [1, 64], strides = [1, 1]} : vector<18x64xf32> to vector<1x64xf32>
    %144 = vector.broadcast %143 : vector<1x64xf32> to vector<64x64xf32>
    %145 = arith.mulf %142, %144 : vector<64x64xf32>
    %146 = arith.addf %141, %145 : vector<64x64xf32>
    %147 = vector.broadcast %14 : vector<64x1xf32> to vector<64x64xf32>
    %148 = arith.mulf %146, %147 : vector<64x64xf32>
    %149 = vector.extract_strided_slice %56 {offsets = [12, 0], sizes = [1, 64], strides = [1, 1]} : vector<18x64xf32> to vector<1x64xf32>
    %150 = vector.broadcast %149 : vector<1x64xf32> to vector<64x64xf32>
    %151 = arith.mulf %129, %150 : vector<64x64xf32>
    %152 = vector.extract_strided_slice %56 {offsets = [13, 0], sizes = [1, 64], strides = [1, 1]} : vector<18x64xf32> to vector<1x64xf32>
    %153 = vector.broadcast %152 : vector<1x64xf32> to vector<64x64xf32>
    %154 = arith.mulf %126, %153 : vector<64x64xf32>
    %155 = arith.addf %151, %154 : vector<64x64xf32>
    %156 = vector.extract_strided_slice %56 {offsets = [14, 0], sizes = [1, 64], strides = [1, 1]} : vector<18x64xf32> to vector<1x64xf32>
    %157 = vector.broadcast %156 : vector<1x64xf32> to vector<64x64xf32>
    %158 = arith.mulf %132, %157 : vector<64x64xf32>
    %159 = arith.addf %155, %158 : vector<64x64xf32>
    %160 = arith.addf %148, %159 : vector<64x64xf32>
    %c56_i32_52 = arith.constant 56 : i32
    %161 = tpu.dynamic_rotate %129 by %c56_i32_52 dim 0 : vector<64x64xf32>, i32 -> vector<64x64xf32>
    %162 = vector.extract_strided_slice %56 {offsets = [15, 0], sizes = [1, 64], strides = [1, 1]} : vector<18x64xf32> to vector<1x64xf32>
    %163 = vector.broadcast %162 : vector<1x64xf32> to vector<64x64xf32>
    %164 = arith.mulf %161, %163 : vector<64x64xf32>
    %c56_i32_53 = arith.constant 56 : i32
    %165 = tpu.dynamic_rotate %126 by %c56_i32_53 dim 0 : vector<64x64xf32>, i32 -> vector<64x64xf32>
    %166 = vector.extract_strided_slice %56 {offsets = [16, 0], sizes = [1, 64], strides = [1, 1]} : vector<18x64xf32> to vector<1x64xf32>
    %167 = vector.broadcast %166 : vector<1x64xf32> to vector<64x64xf32>
    %168 = arith.mulf %165, %167 : vector<64x64xf32>
    %169 = arith.addf %164, %168 : vector<64x64xf32>
    %c56_i32_54 = arith.constant 56 : i32
    %170 = tpu.dynamic_rotate %132 by %c56_i32_54 dim 0 : vector<64x64xf32>, i32 -> vector<64x64xf32>
    %171 = vector.extract_strided_slice %56 {offsets = [17, 0], sizes = [1, 64], strides = [1, 1]} : vector<18x64xf32> to vector<1x64xf32>
    %172 = vector.broadcast %171 : vector<1x64xf32> to vector<64x64xf32>
    %173 = arith.mulf %170, %172 : vector<64x64xf32>
    %174 = arith.addf %169, %173 : vector<64x64xf32>
    %175 = vector.broadcast %15 : vector<64x1xf32> to vector<64x64xf32>
    %176 = arith.mulf %174, %175 : vector<64x64xf32>
    %177 = arith.addf %160, %176 : vector<64x64xf32>
    %178 = vector.broadcast %4 : vector<1x64xf32> to vector<64x64xf32>
    %179 = arith.addf %177, %178 : vector<64x64xf32>
    %180 = vector.broadcast %5 : vector<1x64xf32> to vector<64x64xf32>
    %181 = arith.mulf %180, %179 : vector<64x64xf32>
    %182 = arith.addf %181, %22 : vector<64x64xf32>
    %183 = arith.truncf %182 : vector<64x64xf32> to vector<64x64xbf16>
    %c0_55 = arith.constant 0 : index
    %c0_56 = arith.constant 0 : index
    %184 = vector.load %arg4[%c0_55, %c0_56] : memref<64x32xbf16, #tpu.memory_space<vmem>>, vector<64x32xbf16>
    %cst_57 = arith.constant dense<0.000000e+00> : vector<64x32xf32>
    %185 = tpu.matmul %183, %184, %cst_57 {dimension_numbers = #tpu.dot_dimension_numbers<[1], [0], [0], [1], [0, 0, 1, 1], [], []>} : vector<64x64xbf16>, vector<64x32xbf16>, vector<64x32xf32> -> vector<64x32xf32>
    %186 = vector.broadcast %9 : vector<1x32xf32> to vector<64x32xf32>
    %187 = arith.addf %185, %186 : vector<64x32xf32>
    %cst_58 = arith.constant dense<0.000000e+00> : vector<64xf32>
    %188 = vector.multi_reduction <add>, %187, %cst_58 [1] : vector<64x32xf32> to vector<64xf32>
    %189 = vector.shape_cast %188 : vector<64xf32> to vector<64x1xf32>
    %cst_59 = arith.constant 3.200000e+01 : f32
    %190 = vector.broadcast %cst_59 : f32 to vector<64x1xf32>
    %191 = arith.divf %189, %190 : vector<64x1xf32>
    %192 = vector.broadcast %191 : vector<64x1xf32> to vector<64x32xf32>
    %193 = arith.subf %187, %192 : vector<64x32xf32>
    %194 = arith.mulf %193, %193 : vector<64x32xf32>
    %cst_60 = arith.constant dense<0.000000e+00> : vector<64xf32>
    %195 = vector.multi_reduction <add>, %194, %cst_60 [1] : vector<64x32xf32> to vector<64xf32>
    %196 = vector.shape_cast %195 : vector<64xf32> to vector<64x1xf32>
    %cst_61 = arith.constant 3.200000e+01 : f32
    %197 = vector.broadcast %cst_61 : f32 to vector<64x1xf32>
    %198 = arith.divf %196, %197 : vector<64x1xf32>
    %199 = vector.broadcast %191 : vector<64x1xf32> to vector<64x32xf32>
    %200 = arith.subf %187, %199 : vector<64x32xf32>
    %cst_62 = arith.constant 9.99999974E-6 : f32
    %201 = vector.broadcast %cst_62 : f32 to vector<64x1xf32>
    %202 = arith.addf %198, %201 : vector<64x1xf32>
    %203 = math.rsqrt %202 : vector<64x1xf32>
    %204 = vector.broadcast %203 : vector<64x1xf32> to vector<64x32xf32>
    %205 = arith.mulf %200, %204 : vector<64x32xf32>
    %206 = vector.broadcast %10 : vector<1x32xf32> to vector<64x32xf32>
    %207 = arith.mulf %205, %206 : vector<64x32xf32>
    %208 = vector.broadcast %11 : vector<1x32xf32> to vector<64x32xf32>
    %209 = arith.addf %207, %208 : vector<64x32xf32>
    %210 = vector.broadcast %55 : vector<1x32xf32> to vector<64x32xf32>
    %211 = arith.mulf %210, %209 : vector<64x32xf32>
    %c0_63 = arith.constant 0 : index
    %c0_64 = arith.constant 0 : index
    %c0_65 = arith.constant 0 : index
    %212 = vector.load %arg9[%c0_63, %c0_64, %c0_65] : memref<1x64x32xf32, #tpu.memory_space<vmem>>, vector<1x64x32xf32>
    %213 = vector.shape_cast %212 : vector<1x64x32xf32> to vector<64x32xf32>
    %214 = vector.shape_cast %211 : vector<64x32xf32> to vector<1x64x32xf32>
    tpu.vector_store %arg9[%c0_63, %c0_64, %c0_65], %214 {strides = array<i32>} : memref<1x64x32xf32, #tpu.memory_space<vmem>>, vector<1x64x32xf32>,
    return
  }
  func.func @transform_0(%arg0: i32) -> (i32, i32, i32) {
    %c0_i32 = arith.constant 0 : i32
    %c0_i32_0 = arith.constant 0 : i32
    %c0_i32_1 = arith.constant 0 : i32
    return %arg0, %c0_i32, %c0_i32_0 : i32, i32, i32
  }
  func.func @transform_1(%arg0: i32) -> (i32, i32) {
    %c0_i32 = arith.constant 0 : i32
    %c0_i32_0 = arith.constant 0 : i32
    %c0_i32_1 = arith.constant 0 : i32
    return %c0_i32, %c0_i32_0 : i32, i32
  }
  func.func @transform_2(%arg0: i32) -> (i32, i32) {
    %c0_i32 = arith.constant 0 : i32
    %c0_i32_0 = arith.constant 0 : i32
    %c0_i32_1 = arith.constant 0 : i32
    return %c0_i32, %c0_i32_0 : i32, i32
  }
  func.func @transform_3(%arg0: i32) -> (i32, i32) {
    %c0_i32 = arith.constant 0 : i32
    %c0_i32_0 = arith.constant 0 : i32
    %c0_i32_1 = arith.constant 0 : i32
    return %c0_i32, %c0_i32_0 : i32, i32
  }
  func.func @transform_4(%arg0: i32) -> (i32, i32) {
    %c0_i32 = arith.constant 0 : i32
    %c0_i32_0 = arith.constant 0 : i32
    %c0_i32_1 = arith.constant 0 : i32
    return %c0_i32, %c0_i32_0 : i32, i32
  }
  func.func @transform_5(%arg0: i32) -> (i32, i32) {
    %c0_i32 = arith.constant 0 : i32
    %c0_i32_0 = arith.constant 0 : i32
    %c0_i32_1 = arith.constant 0 : i32
    return %c0_i32, %c0_i32_0 : i32, i32
  }
  func.func @transform_6(%arg0: i32) -> (i32, i32) {
    %c0_i32 = arith.constant 0 : i32
    %c0_i32_0 = arith.constant 0 : i32
    %c0_i32_1 = arith.constant 0 : i32
    return %c0_i32, %c0_i32_0 : i32, i32
  }
  func.func @transform_7(%arg0: i32) -> (i32, i32) {
    %c0_i32 = arith.constant 0 : i32
    %c0_i32_0 = arith.constant 0 : i32
    %c0_i32_1 = arith.constant 0 : i32
    return %c0_i32, %c0_i32_0 : i32, i32
  }
  func.func @transform_8(%arg0: i32) -> (i32, i32, i32) {
    %c0_i32 = arith.constant 0 : i32
    %c0_i32_0 = arith.constant 0 : i32
    %c0_i32_1 = arith.constant 0 : i32
    return %arg0, %c0_i32, %c0_i32_0 : i32, i32, i32
  }
}

</mosaic_0001>

<bundles_post_ra>
// kernel: tpu_custom_call.1
= control target key start
LH: loop header
LB: loop body
LE: loop exit
PB: predicated region body
PF: predicated region fallthrough
CT: control target
= control target key end

     0   :  { %s2145_s27 = smov 0   ;;  %s3424_s0 = inlined_call_operand.vmem [shape: f32[2,64,32], index: 0, kind: input, shape index: {}]   ;;  %s3425_s1 = inlined_call_operand.vmem [shape: bf16[32,96], index: 1, kind: input, shape index: {}]   ;;  %s3426_s2 = inlined_call_operand.vmem [shape: bf16[32,32], index: 2, kind: input, shape index: {}]   ;;  %s3427_s3 = inlined_call_operand.vmem [shape: bf16[64,32], index: 3, kind: input, shape index: {}]   ;;  %s3428_s4 = inlined_call_operand.vmem [shape: f32[18,64], index: 4, kind: input, shape index: {}]   ;;  %s3429_s5 = inlined_call_operand.vmem [shape: f32[6,64], index: 5, kind: input, shape index: {}]   ;;  %s3430_s6 = inlined_call_operand.vmem [shape: f32[4,32], index: 6, kind: input, shape index: {}]   ;;  %s3431_s7 = inlined_call_operand.vmem [shape: f32[64,4], index: 7, kind: input, shape index: {}]   ;;  %s3432_s8 = inlined_call_operand.vmem [shape: f32[2,64,32], index: 8, kind: output, shape index: {}]  }
   0x1 LB: > { %s1874_s28 = sadd.s32 4294967295, %s2092_s27   ;;  %p1878_p0 = scmp.ge.s32.totalorder %s2092_s27, 1  ;;  %s2092_s27 = sphi %s2145_s27, %s18_s27  }
   0x2   : > { %p262_p1 = scmp.lt.s32.totalorder %s2092_s27, 3 }
   0x4   : > { %p263_p2 = pnand %p1878_p0, %p262_p1 }
   0x6   : > { %266 = sbr.rel (%p263_p2) target bundleno = 1043 (0x413), region = 52 }
   0xd   : > { %v2006_v0 = vld [vmem:[%s3425_s1] sm:$0xff]   ;;  %p296_p3 = scmp.lt.s32.totalorder %s1874_s28, 1  ;;  %v772_v1 = vlaneseq  ;;  %v2007_v2 = vld [vmem:[%s3425_s1 + $0x8] sm:$0xff]   ;;  %vm353_vm0 = vcmask 261120   ;;  %s2094_s21 = smov 32   ;;  %v2095_v13 = vmov 0  }
   0xe   : > { %1936 = vmatprep.subr.bf16.mxu0 %v2006_v0  ;;  %v2008_v3 = vld [vmem:[%s3426_s2] sm:$0xff]   ;;  %v2009_v4 = vld [vmem:[%s3426_s2 + $0x8] sm:$0xff]   ;;  %1998 = vset.pattern.permute.xlu1 %v2095_v13  ;;  %v2226_v27 = vld [vmem:[%s3431_s7 + $0x10] sm:$0xff]  ;;  %v2096_v52 = vmov 1   ;;  %vm1592_vm3 = vcmask 523264  }
   0xf   : > { %s3670_s28 = smov (!%p296_p3, %s1874_s28), 1  ;;  %1937 = vmatpush3.bf16.msra.mxu0 %v2006_v0  ;;  %1948 = vmatprep.subr.bf16.mxu1 %v2008_v3  ;;  %v1889_v5 = vld [vmem:[%s3429_s5] ss:$0 sm:$0xff]  ;;  %v2171_v6 = vshrl.u32 %v772_v1, 7  ;;  %v2182_v7 = vld [vmem:[%s3431_s7 + $0x8] sm:$0xff]  ;;  %v2252_v41 = vld [vmem:[%s3431_s7 + $0x18] sm:$0xff] }
  0x10   : > { %1938 = vmatprep.subr.bf16.mxu0 %v2007_v2  ;;  %s1914_s15 = sshll.u32 %s3670_s28, 6  ;;  %1949 = vmatpush3.bf16.msra.mxu1 %v2008_v3  ;;  %v2193_v11 = vld [vmem:[%s3428_s4] sm:$0xff]  ;;  %v2244_v38 = vld [vmem:[%s3431_s7 + $0x28] sm:$0xff]  ;;  %v2258_v43 = vld [vmem:[%s3431_s7 + $0x30] sm:$0xff] }
  0x11   : > { %s300_s20 = scalar_lea.vmem %s3424_s0, %s1914_s15  ;;  %436 = vrot.lane.b32.xlu0 %v1889_v5, %s2094_s21  ;;  %1950 = vmatprep.subr.bf16.mxu1 %v2009_v4  ;;  %v994_v12 = vsub.s32 4, %v2171_v6  ;;  %v2265_v45 = vld [vmem:[%s3431_s7 + $0x38] sm:$0xff]  ;;  %v2271_v47 = vld [vmem:[%s3431_s7] sm:$0xff]  ;;  %vm839_vm1 = vcmp.lt.s32.totalorder %v2171_v6, 7  ;;  %vm774_vm2 = vcmp.lt.s32.totalorder %v2171_v6, 1  ;;  %s3374_s16 = scalar_lea.vmem %s3432_s8, %s1914_s15 }
  0x12   : > { %v2184_v8 = vld [vmem:[%s300_s20] sm:$0xff]  ;;  %v2186_v9 = vld [vmem:[%s300_s20 + $0x8] sm:$0xff]  ;;  %v2188_v10 = vld [vmem:[%s300_s20 + $0x10] sm:$0xff]  ;;  %790 = vperm.xlu1 %1998, %v2182_v7   ;;  %1999 = vset.pattern.permute.xlu0 %v2095_v13 }
  0x13   : > { %1939 = vmatpush3.bf16.msra.mxu0 %v2007_v2  ;;  %v2196_v14 = vld [vmem:[%s300_s20 + $0x18] sm:$0xff]  ;;  %v2198_v15 = vld [vmem:[%s300_s20 + $0x20] sm:$0xff]  ;;  %v2200_v16 = vld [vmem:[%s300_s20 + $0x28] sm:$0xff]  ;;  %v333_v17 = vpack.c.bf16 %v2186_v9, %v2184_v8  ;;  %v522_v18 = vsel %vm353_vm0, %v2184_v8, -inf  ;;  %v523_v19 = vsel %vm353_vm0, %v2186_v9, -inf  ;;  %v524_v20 = vsel %vm353_vm0, %v2188_v10, -inf }
  0x14   : > { %v2211_v21 = vld [vmem:[%s300_s20 + $0x30] sm:$0xff]  ;;  %v2213_v22 = vld [vmem:[%s300_s20 + $0x38] sm:$0xff]  ;;  %v525_v23 = vsel %vm353_vm0, %v2196_v14, -inf  ;;  %v526_v24 = vsel %vm353_vm0, %v2198_v15, -inf  ;;  %v528_v25 = vsel %vm353_vm0, %v2200_v16, -inf  ;;  %v334_v26 = vpack.c.bf16 %v2196_v14, %v2188_v10  ;;  %1951 = vmatpush3.bf16.msra.mxu1 %v2009_v4  ;;  %v2277_v49 = vld [vmem:[%s3431_s7 + $0x20] sm:$0xff] }
  0x15   : > { %1940 = vmatprep.mubr.msk.bf16.mxu0 %vm353_vm0, %v333_v17  ;;  %v527_v28 = vmax.f32 %v522_v18, %v526_v24  ;;  %v529_v29 = vmax.f32 %v523_v19, %v528_v25  ;;  %v530_v30 = vsel %vm353_vm0, %v2211_v21, -inf  ;;  %v532_v31 = vsel %vm353_vm0, %v2213_v22, -inf }
  0x16   : > { %v531_v32 = vmax.f32 %v524_v20, %v530_v30  ;;  %v533_v33 = vmax.f32 %v525_v23, %v532_v31  ;;  %1941 = vmatmul.mubr.msk.bf16.vlgmr.msra.gmra.mrb[0].mxu0 %vm353_vm0, %v334_v26  ;;  %v335_v34 = vpack.c.bf16 %v2200_v16, %v2198_v15  ;;  %v995_v36 = vrot.slane %v2193_v11, %v994_v12 }
  0x17   : > { %v534_v35 = vmax.f32 %v527_v28, %v529_v29  ;;  %795 = vperm.xlu1 %1998, %v2226_v27   ;;  %v336_v40 = vpack.c.bf16 %v2213_v22, %v2211_v21 }
  0x18   : > { %v535_v37 = vmax.f32 %v531_v32, %v533_v33  ;;  %1944 = vmatprep.mubr.msk.bf16.mxu0 %vm353_vm0, %v335_v34  ;;  %997 = vrot.lane.b32.xlu0 %v995_v36, %s2094_s21  ;;  %s2099_s21 = smov 96  }
  0x1a   : > { %v536_v39 = vmax.f32 %v534_v35, %v535_v37  ;;  %v2098_v35 = vmov 3  }
  0x1b   : > { %810 = vperm.xlu1 %1998, %v2244_v38  }
  0x1c   : > { %v537_v42 = vrot.slane %v536_v39, 4  ;;  %800 = vperm.xlu0 %1999, %v2252_v41  }
  0x1e   : > { %v538_v44 = vmax.f32 %v536_v39, %v537_v42  ;;  %1945 = vmatmul.mubr.msk.bf16.gmra.mrb[4].mxu0 %vm353_vm0, %v336_v40 }
  0x1f   : > { %815 = vperm.xlu1 %1998, %v2258_v43  }
  0x20   : > { %v539_v46 = vrot.slane %v538_v44, 2  ;;  %820 = vperm.xlu0 %1999, %v2265_v45  }
  0x22   : > { %v540_v48 = vmax.f32 %v538_v44, %v539_v46 }
  0x23   : > { %785 = vperm.xlu1 %1998, %v2271_v47  }
  0x24   : > { %v541_v50 = vrot.slane %v540_v48, 1  ;;  %805 = vperm.xlu0 %1999, %v2277_v49  }
  0x26   : > { %v542_v51 = vmax.f32 %v540_v48, %v541_v50 }
  0x27   : > { %2000 = vset.pattern.permute.xlu1 %v2096_v52 }
  0x28   : > { %v543_v53 = vsub.f32 %v2184_v8, %v542_v51  ;;  %v544_v54 = vsub.f32 %v2186_v9, %v542_v51  ;;  %v545_v55 = vsub.f32 %v2188_v10, %v542_v51  ;;  %v546_v56 = vsub.f32 %v2196_v14, %v542_v51  ;;  %853 = vperm.xlu1 %2000, %v2182_v7  }
  0x29   : > { %v547_v57 = vsub.f32 %v2198_v15, %v542_v51  ;;  %v548_v58 = vsub.f32 %v2200_v16, %v542_v51  ;;  %2001 = vset.pattern.permute.xlu0 %v2096_v52  ;;  %v549_v62 = vsub.f32 %v2211_v21, %v542_v51  ;;  %v550_v1 = vsub.f32 %v2213_v22, %v542_v51 }
  0x2a   : > { %v551_v59 = vmul.f32 1.442695, %v543_v53  ;;  %v553_v60 = vmul.f32 1.442695, %v544_v54  ;;  %v555_v61 = vmul.f32 1.442695, %v545_v55  ;;  %857 = vperm.xlu0 %2001, %v2226_v27  }
  0x2b   : > { %v557_v63 = vmul.f32 1.442695, %v546_v56  ;;  %v559_v0 = vmul.f32 1.442695, %v547_v57  ;;  %v561_v2 = vmul.f32 1.442695, %v548_v58 }
  0x2c   : > { %2014 = vpow2.f32 %v551_v59  ;;  %861 = vperm.xlu1 %2000, %v2252_v41   ;;  %v563_v3 = vmul.f32 1.442695, %v549_v62  ;;  %v565_v4 = vmul.f32 1.442695, %v550_v1  ;;  %v2097_v8 = vmov 2  }
  0x2d   : > { %2016 = vpow2.f32 %v553_v60 }
  0x2e   : > { %2018 = vpow2.f32 %v555_v61  ;;  %873 = vperm.xlu0 %2001, %v2258_v43  }
  0x2f   : > { %2020 = vpow2.f32 %v557_v63 }
  0x30   : > { %2022 = vpow2.f32 %v559_v0  ;;  %869 = vperm.xlu1 %2000, %v2244_v38  }
  0x31   : > { %2024 = vpow2.f32 %v561_v2 }
  0x32   : > { %849 = vperm.xlu0 %2001, %v2271_v47   ;;  %2026 = vpow2.f32 %v563_v3 }
  0x33   : > { %2028 = vpow2.f32 %v565_v4 }
  0x34   : > { %877 = vperm.xlu1 %2000, %v2265_v45  }
  0x36   : > { %v2015_v5 = vpop.eup %2014  ;;  %2002 = vset.pattern.permute.xlu0 %v2097_v8 }
  0x37   : > { %v2017_v9 = vpop.eup %2016  ;;  %v567_v10 = vsel %vm353_vm0, %v2015_v5, 0.0  ;;  %941 = vperm.xlu0 %2002, %v2271_v47  }
  0x38   : > { %v2019_v13 = vpop.eup %2018  ;;  %v568_v14 = vsel %vm353_vm0, %v2017_v9, 0.0  ;;  %865 = vperm.xlu1 %2000, %v2277_v49  }
  0x39   : > { %v2021_v15 = vpop.eup %2020  ;;  %v569_v16 = vadd.f32 %v568_v14, %v567_v10  ;;  %v570_v17 = vsel %vm353_vm0, %v2019_v13, 0.0 }
  0x3a   : > { %v2023_v18 = vpop.eup %2022  ;;  %v572_v19 = vsel %vm353_vm0, %v2021_v15, 0.0 }
  0x3b   : > { %v2025_v20 = vpop.eup %2024  ;;  %v571_v21 = vadd.f32 %v570_v17, %v569_v16  ;;  %957 = vperm.xlu0 %2002, %v2277_v49   ;;  %v574_v22 = vsel %vm353_vm0, %v2023_v18, 0.0 }
  0x3c   : > { %2003 = vset.pattern.permute.xlu1 %v2097_v8  ;;  %v2027_v23 = vpop.eup %2026  ;;  %v576_v25 = vsel %vm353_vm0, %v2025_v20, 0.0 }
  0x3d   : > { %v573_v24 = vadd.f32 %v572_v19, %v571_v21  ;;  %949 = vperm.xlu1 %2003, %v2226_v27   ;;  %v2029_v26 = vpop.eup %2028  ;;  %v578_v29 = vsel %vm353_vm0, %v2027_v23, 0.0 }
  0x3e   : > { %v580_v31 = vsel %vm353_vm0, %v2029_v26, 0.0 }
  0x3f   : > { %v575_v28 = vadd.f32 %v574_v22, %v573_v24  ;;  %969 = vperm.xlu0 %2002, %v2265_v45  }
  0x41   : > { %v577_v30 = vadd.f32 %v576_v25, %v575_v28  ;;  %953 = vperm.xlu1 %2003, %v2252_v41  }
  0x43   : > { %v579_v32 = vadd.f32 %v578_v29, %v577_v30  ;;  %961 = vperm.xlu0 %2002, %v2244_v38  }
  0x45   : > { %v581_v33 = vadd.f32 %v580_v31, %v579_v32  ;;  %965 = vperm.xlu1 %2003, %v2258_v43  }
  0x47   : > { %v582_v34 = vrot.slane %v581_v33, 4  ;;  %2005 = vset.pattern.permute.xlu0 %v2098_v35 }
  0x48   : > { %1137 = vperm.xlu0 %2005, %v2226_v27  }
  0x49   : > { %v583_v36 = vadd.f32 %v582_v34, %v581_v33  ;;  %945 = vperm.xlu1 %2003, %v2182_v7  }
  0x4b   : > { %v584_v37 = vrot.slane %v583_v36, 2 }
  0x4c   : > { %1153 = vperm.xlu0 %2005, %v2258_v43  }
  0x4d   : > { %v585_v39 = vadd.f32 %v584_v37, %v583_v36  ;;  %2004 = vset.pattern.permute.xlu1 %v2098_v35 }
  0x4e   : > { %1129 = vperm.xlu1 %2004, %v2271_v47  }
  0x4f   : > { %v586_v40 = vrot.slane %v585_v39, 1 }
  0x50   : > { %1133 = vperm.xlu0 %2005, %v2182_v7  }
  0x51   : > { %v587_v42 = vadd.f32 %v586_v40, %v585_v39 }
  0x52   : > { %1141 = vperm.xlu1 %2004, %v2252_v41  }
  0x53   : > { %2030 = vrcp.f32 %v587_v42 }
  0x56   : > { %1145 = vperm.xlu1 %2004, %v2277_v49  }
  0x5a   : > { %1157 = vperm.xlu1 %2004, %v2265_v45  }
  0x5d   : > { %v2031_v27 = vpop.eup %2030 }
  0x5e   : > { %v589_v44 = vmul.f32 %v2031_v27, %v2015_v5  ;;  %v590_v46 = vmul.f32 %v2031_v27, %v2017_v9  ;;  %v591_v48 = vmul.f32 %v2031_v27, %v2019_v13  ;;  %v592_v43 = vmul.f32 %v2031_v27, %v2021_v15  ;;  %1149 = vperm.xlu1 %2004, %v2244_v38  }
  0x5f   : > { %v593_v50 = vmul.f32 %v2031_v27, %v2023_v18  ;;  %v594_v47 = vmul.f32 %v2031_v27, %v2025_v20  ;;  %v595_v41 = vmul.f32 %v2031_v27, %v2027_v23  ;;  %v596_v49 = vmul.f32 %v2031_v27, %v2029_v26 }
  0x60   : > { %v597_v51 = vpack.c.bf16 %v590_v46, %v589_v44  ;;  %v598_v52 = vpack.c.bf16 %v592_v43, %v591_v48 }
  0x61   : > { %v599_v7 = vpack.c.bf16 %v594_v47, %v593_v50  ;;  %v600_v45 = vpack.c.bf16 %v596_v49, %v595_v41 }
  0x62   : > { %1952 = vmatprep.mubr.msk.bf16.mxu1 %vm353_vm0, %v597_v51 }
  0x63   : > { %1953 = vmatmul.mubr.msk.bf16.vlgmr.msra.gmra.mrb[0].mxu1 %vm353_vm0, %v598_v52 }
  0x64   : > { %1956 = vmatprep.mubr.msk.bf16.mxu1 %vm353_vm0, %v599_v7 }
  0x6b   : > { %1957 = vmatmul.mubr.msk.bf16.gmra.mrb[4].mxu1 %vm353_vm0, %v600_v45 }
  0x83   : > { %v437_v53 = vpop.permute.xlu0 %436 }
  0x8a   : > { %v998_v59 = vpop.permute.xlu0 %997 }
  0x91   : > { %v2348_v3 = vpop.permute.xlu1 %790 }
  0x92   : > { %3496 = vst [vmem:[#allocation2_spill] sm:$0xff] %v2348_v3 }
  0x96   : > { %v2369_v25 = vpop.permute.xlu1 %795 }
  0x97   : > { %3497 = vst [vmem:[#allocation3_spill] sm:$0xff] %v2369_v25 }
  0x9a   : > { %v2375_v33 = vpop.permute.xlu1 %810 }
  0x9b   : > { %3498 = vst [vmem:[#allocation4_spill] sm:$0xff] %v2375_v33 }
  0x9e   : > { %v2380_v42 = vpop.permute.xlu1 %815 }
  0xa2   : > { %v2392_v49 = vpop.permute.xlu1 %785 }
  0xa3   : > { %3499 = vst [vmem:[#allocation5_spill] sm:$0xff] %v2392_v49 }
  0xe9   : > { %v2325_v54 = vpop.f32.mrb[0].mxu0 }
  0xea   : > { %v441_v38 = vadd.f32 %v2325_v54, %v437_v53  ;;  %v2328_v55 = vpop.f32.mrb[1].mxu0  ;;  %v449_v63 = vsel %vm353_vm0, %v2325_v54, -inf }
  0xeb   : > { %v2330_v56 = vpop.f32.mrb[2].mxu0  ;;  %v439_v60 = vadd.f32 %v437_v53, %v2328_v55  ;;  %v447_v4 = vsel %vm353_vm0, %v2328_v55, -inf }
  0xec   : > { %v442_v57 = vadd.f32 %v2330_v56, %v437_v53  ;;  %744 = vrot.lane.b32.xlu0 %v441_v38, %s2099_s21  ;;  %v2334_v58 = vpop.f32.mrb[3].mxu0  ;;  %v1002_v61 = vmul.f32 %v998_v59, %v441_v38  ;;  %v450_v10 = vsel %vm353_vm0, %v2330_v56, -inf }
  0xed   : > { %v1000_v2 = vmul.f32 %v998_v59, %v439_v60  ;;  %v440_v13 = vadd.f32 %v437_v53, %v2334_v58  ;;  %v448_v17 = vsel %vm353_vm0, %v2334_v58, -inf }
  0xee   : > { %746 = vrot.lane.b32.xlu1 %v442_v57, %s2099_s21  ;;  %v1003_v32 = vmul.f32 %v998_v59, %v442_v57  ;;  %v2394_v57 = vpop.permute.xlu1 %853 }
  0xef   : > { %v1001_v44 = vmul.f32 %v998_v59, %v440_v13  ;;  %3500 = vst [vmem:[#allocation6_spill] sm:$0xff] %v2394_v57 }
  0xf0   : > { %740 = vrot.lane.b32.xlu0 %v439_v60, %s2099_s21 }
  0xf1   : > { %v2339_v62 = vpop.f32.mrb[4].mxu0 }
  0xf2   : > { %v455_v0 = vsel %vm353_vm0, %v2339_v62, -inf  ;;  %1020 = vrot.lane.b32.xlu1 %v1002_v61, %s2099_s21  ;;  %v2346_v1 = vpop.f32.mrb[5].mxu0  ;;  %v445_v20 = vadd.f32 %v2339_v62, %v437_v53  ;;  %v2398_v60 = vpop.permute.xlu1 %861 }
  0xf3   : > { %v456_v5 = vmax.f32 %v449_v63, %v455_v0  ;;  %v451_v8 = vsel %vm353_vm0, %v2346_v1, -inf  ;;  %v2354_v9 = vpop.f32.mrb[6].mxu0  ;;  %v443_v26 = vadd.f32 %v437_v53, %v2346_v1  ;;  %3502 = vst [vmem:[#allocation8_spill] sm:$0xff] %v2398_v60 }
  0xf4   : > { %v452_v14 = vmax.f32 %v447_v4, %v451_v8  ;;  %v457_v15 = vsel %vm353_vm0, %v2354_v9, -inf  ;;  %1016 = vrot.lane.b32.xlu0 %v1000_v2, %s2099_s21  ;;  %v419_v16 = vpop.f32.mrb[7].mxu0  ;;  %v446_v23 = vadd.f32 %v2354_v9, %v437_v53  ;;  %v1006_v37 = vmul.f32 %v998_v59, %v445_v20 }
  0xf5   : > { %v458_v18 = vmax.f32 %v450_v10, %v457_v15  ;;  %v453_v19 = vsel %vm353_vm0, %v419_v16, -inf  ;;  %v444_v29 = vadd.f32 %v437_v53, %v419_v16  ;;  %v1004_v35 = vmul.f32 %v998_v59, %v443_v26 }
  0xf6   : > { %v454_v21 = vmax.f32 %v448_v17, %v453_v19  ;;  %742 = vrot.lane.b32.xlu1 %v440_v13, %s2099_s21  ;;  %v1007_v40 = vmul.f32 %v998_v59, %v446_v23  ;;  %v2403_v4 = vpop.permute.xlu1 %869 }
  0xf7   : > { %v460_v22 = vmax.f32 %v456_v5, %v458_v18  ;;  %v1005_v46 = vmul.f32 %v998_v59, %v444_v29  ;;  %3504 = vst [vmem:[#allocation10_spill] sm:$0xff] %v2403_v4 }
  0xf8   : > { %v459_v24 = vmax.f32 %v452_v14, %v454_v21  ;;  %752 = vrot.lane.b32.xlu0 %v445_v20, %s2099_s21 }
  0xfa   : > { %v461_v28 = vmax.f32 %v459_v24, %v460_v22  ;;  %754 = vrot.lane.b32.xlu1 %v446_v23, %s2099_s21  ;;  %v2410_v19 = vpop.permute.xlu1 %877 }
  0xfb   : > { %3506 = vst [vmem:[#allocation12_spill] sm:$0xff] %v2410_v19 }
  0xfc   : > { %v462_v30 = vrot.slane %v461_v28, 4  ;;  %748 = vrot.lane.b32.xlu0 %v443_v26, %s2099_s21 }
  0xfe   : > { %v463_v31 = vmax.f32 %v461_v28, %v462_v30  ;;  %750 = vrot.lane.b32.xlu1 %v444_v29, %s2099_s21 }
 0x100   : > { %v464_v34 = vrot.slane %v463_v31, 2  ;;  %1022 = vrot.lane.b32.xlu0 %v1003_v32, %s2099_s21 }
 0x102   : > { %v465_v36 = vmax.f32 %v463_v31, %v464_v34  ;;  %1024 = vrot.lane.b32.xlu1 %v1004_v35, %s2099_s21  ;;  %v2417_v31 = vpop.permute.xlu1 %865 }
 0x103   : > { %3508 = vst [vmem:[#allocation14_spill] sm:$0xff] %v2417_v31 }
 0x104   : > { %v466_v39 = vrot.slane %v465_v36, 1  ;;  %1028 = vrot.lane.b32.xlu0 %v1006_v37, %s2099_s21 }
 0x106   : > { %v467_v27 = vmax.f32 %v465_v36, %v466_v39  ;;  %1030 = vrot.lane.b32.xlu1 %v1007_v40, %s2099_s21  ;;  %v2422_v37 = vpop.permute.xlu1 %949 }
 0x107   : > { %3509 = vst [vmem:[#allocation15_spill] sm:$0xff] %v2422_v37 }
 0x108   : > { %v471_v48 = vsub.f32 %v2330_v56, %v467_v27  ;;  %v473_v43 = vsub.f32 %v419_v16, %v467_v27  ;;  %v474_v50 = vsub.f32 %v2339_v62, %v467_v27  ;;  %v475_v47 = vsub.f32 %v2354_v9, %v467_v27  ;;  %1018 = vrot.lane.b32.xlu0 %v1001_v44, %s2099_s21 }
 0x109   : > { %v468_v51 = vsub.f32 %v2328_v55, %v467_v27  ;;  %v469_v52 = vsub.f32 %v2334_v58, %v467_v27  ;;  %v470_v7 = vsub.f32 %v2325_v54, %v467_v27  ;;  %v472_v41 = vsub.f32 %v2346_v1, %v467_v27  ;;  %v2396_v58 = vpop.permute.xlu0 %800 }
 0x10a   : > { %1026 = vrot.lane.b32.xlu1 %v1005_v46, %s2099_s21  ;;  %v482_v56 = vmul.f32 1.442695, %v471_v48  ;;  %v486_v55 = vmul.f32 1.442695, %v473_v43  ;;  %3501 = vst [vmem:[#allocation7_spill] sm:$0xff] %v2396_v58  ;;  %v2426_v46 = vpop.permute.xlu1 %953 }
 0x10b   : > { %v476_v45 = vmul.f32 1.442695, %v468_v51  ;;  %v478_v53 = vmul.f32 1.442695, %v469_v52  ;;  %v480_v38 = vmul.f32 1.442695, %v470_v7 }
 0x10c   : > { %v484_v59 = vmul.f32 1.442695, %v472_v41  ;;  %v488_v54 = vmul.f32 1.442695, %v474_v50  ;;  %v490_v61 = vmul.f32 1.442695, %v475_v47 }
 0x10d   : > { %2032 = vpow2.f32 %v476_v45  ;;  %v2400_v62 = vpop.permute.xlu0 %820 }
 0x10e   : > { %2034 = vpow2.f32 %v478_v53  ;;  %3503 = vst [vmem:[#allocation9_spill] sm:$0xff] %v2400_v62  ;;  %v2430_v52 = vpop.permute.xlu1 %965 }
 0x10f   : > { %2036 = vpow2.f32 %v480_v38  ;;  %3511 = vst [vmem:[#allocation17_spill] sm:$0xff] %v2430_v52 }
 0x110   : > { %2038 = vpow2.f32 %v482_v56 }
 0x111   : > { %2040 = vpow2.f32 %v484_v59  ;;  %v2407_v14 = vpop.permute.xlu0 %805 }
 0x112   : > { %2042 = vpow2.f32 %v486_v55  ;;  %3505 = vst [vmem:[#allocation11_spill] sm:$0xff] %v2407_v14  ;;  %v2434_v53 = vpop.permute.xlu1 %945 }
 0x113   : > { %2044 = vpow2.f32 %v488_v54  ;;  %3513 = vst [vmem:[#allocation19_spill] sm:$0xff] %v2434_v53 }
 0x114   : > { %2046 = vpow2.f32 %v490_v61 }
 0x115   : > { %v2414_v26 = vpop.permute.xlu0 %857 }
 0x116   : > { %3507 = vst [vmem:[#allocation13_spill] sm:$0xff] %v2414_v26 }
 0x117   : > { %v2033_v63 = vpop.eup %2032 }
 0x118   : > { %v2035_v0 = vpop.eup %2034  ;;  %v492_v1 = vsel %vm353_vm0, %v2033_v63, 0.0 }
 0x119   : > { %v2037_v2 = vpop.eup %2036  ;;  %v493_v5 = vsel %vm353_vm0, %v2035_v0, 0.0  ;;  %v2420_v35 = vpop.permute.xlu0 %873 }
 0x11a   : > { %v2039_v8 = vpop.eup %2038  ;;  %v494_v9 = vadd.f32 %v493_v5, %v492_v1  ;;  %v495_v10 = vsel %vm353_vm0, %v2037_v2, 0.0 }
 0x11b   : > { %v2041_v13 = vpop.eup %2040  ;;  %v497_v16 = vsel %vm353_vm0, %v2039_v8, 0.0 }
 0x11c   : > { %v496_v15 = vadd.f32 %v495_v10, %v494_v9  ;;  %v2043_v17 = vpop.eup %2042  ;;  %v499_v20 = vsel %vm353_vm0, %v2041_v13, 0.0 }
 0x11d   : > { %v2045_v21 = vpop.eup %2044  ;;  %v501_v23 = vsel %vm353_vm0, %v2043_v17, 0.0  ;;  %v2424_v27 = vpop.permute.xlu0 %849 }
 0x11e   : > { %v498_v18 = vadd.f32 %v497_v16, %v496_v15  ;;  %v2047_v24 = vpop.eup %2046  ;;  %v503_v29 = vsel %vm353_vm0, %v2045_v21, 0.0  ;;  %3510 = vst [vmem:[#allocation16_spill] sm:$0xff] %v2424_v27 }
 0x11f   : > { %v505_v32 = vsel %vm353_vm0, %v2047_v24, 0.0 }
 0x120   : > { %v500_v22 = vadd.f32 %v499_v20, %v498_v18 }
 0x121   : > { %v2428_v47 = vpop.permute.xlu0 %941 }
 0x122   : > { %v502_v28 = vadd.f32 %v501_v23, %v500_v22 }
 0x124   : > { %v504_v30 = vadd.f32 %v503_v29, %v502_v28  ;;  %v2436_v29 = vpop.permute.xlu1 %1129 }
 0x125   : > { %v2432_v45 = vpop.permute.xlu0 %957  ;;  %3514 = vst [vmem:[#allocation20_spill] sm:$0xff] %v2436_v29 }
 0x126   : > { %v506_v34 = vadd.f32 %v505_v32, %v504_v30  ;;  %3512 = vst [vmem:[#allocation18_spill] sm:$0xff] %v2432_v45 }
 0x128   : > { %v507_v36 = vrot.slane %v506_v34, 4 }
 0x129   : > { %v2438_v30 = vpop.permute.xlu0 %969 }
 0x12a   : > { %v508_v39 = vadd.f32 %v507_v36, %v506_v34  ;;  %3515 = vst [vmem:[#allocation21_spill] sm:$0xff] %v2438_v30 }
 0x12c   : > { %v509_v40 = vrot.slane %v508_v39, 2 }
 0x12e   : > { %v510_v44 = vadd.f32 %v509_v40, %v508_v39  ;;  %v2450_v40 = vpop.permute.xlu1 %1141 }
 0x130   : > { %v511_v48 = vrot.slane %v510_v44, 1 }
 0x132   : > { %v512_v43 = vadd.f32 %v511_v48, %v510_v44  ;;  %v2452_v44 = vpop.permute.xlu0 %961 }
 0x133   : > { %3516 = vst [vmem:[#allocation22_spill] sm:$0xff] %v2452_v44 }
 0x134   : > { %2048 = vrcp.f32 %v512_v43  ;;  %v2012_v43 = vld [vmem:[%s3427_s3 + $0x10] sm:$0xff]  }
 0x136   : > { %v1954_v50 = vpop.f32.mrb[0].mxu1 }
 0x137   : > { %v663_v51 = vpop.f32.mrb[1].mxu1 }
 0x138   : > { %v1955_v7 = vpop.f32.mrb[2].mxu1 }
 0x139   : > { %v666_v41 = vpop.f32.mrb[3].mxu1 }
 0x13e   : > { %v1958_v38 = vpop.f32.mrb[4].mxu1  ;;  %v2049_v55 = vpop.eup %2048 }
 0x13f   : > { %v679_v56 = vpop.f32.mrb[5].mxu1  ;;  %v516_v61 = vmul.f32 %v2049_v55, %v2037_v2  ;;  %v514_v1 = vmul.f32 %v2049_v55, %v2033_v63  ;;  %v517_v5 = vmul.f32 %v2049_v55, %v2039_v8  ;;  %v515_v9 = vmul.f32 %v2049_v55, %v2035_v0  ;;  %v2010_v8 = vld [vmem:[%s3427_s3] sm:$0xff]  }
 0x140   : > { %v1959_v59 = vpop.f32.mrb[6].mxu1  ;;  %v520_v10 = vmul.f32 %v2049_v55, %v2045_v21  ;;  %v518_v15 = vmul.f32 %v2049_v55, %v2041_v13  ;;  %v521_v16 = vmul.f32 %v2049_v55, %v2047_v24  ;;  %v519_v18 = vmul.f32 %v2049_v55, %v2043_v17  ;;  %v2011_v13 = vld [vmem:[%s3427_s3 + $0x8] sm:$0xff]   ;;  %1960 = vmatprep.subr.bf16.mxu0 %v2010_v8  ;;  %v2465_v55 = vpop.permute.xlu1 %1145 }
 0x141   : > { %v682_v54 = vpop.f32.mrb[7].mxu1  ;;  %v696_v20 = vmul.f32 %v1954_v50, %v516_v61  ;;  %v694_v22 = vmul.f32 %v663_v51, %v514_v1  ;;  %v697_v23 = vmul.f32 %v1955_v7, %v517_v5  ;;  %v695_v28 = vmul.f32 %v666_v41, %v515_v9  ;;  %1976 = vmatprep.subr.bf16.mxu1 %v2010_v8  ;;  %v2459_v41 = vpop.permute.xlu0 %1137 }
 0x142   : > { %v700_v32 = vmul.f32 %v1958_v38, %v520_v10  ;;  %v698_v34 = vmul.f32 %v679_v56, %v518_v15  ;;  %v701_v36 = vmul.f32 %v1959_v59, %v521_v16  ;;  %v699_v39 = vmul.f32 %v682_v54, %v519_v18  ;;  %1961 = vmatpush3.bf16.msra.mxu0 %v2010_v8  ;;  %v2013_v56 = vld [vmem:[%s3427_s3 + $0x18] sm:$0xff]  }
 0x143   : > { %v702_v63 = vsel %vm353_vm0, %v694_v22, 0.0  ;;  %v703_v0 = vsel %vm353_vm0, %v695_v28, 0.0  ;;  %v705_v17 = vsel %vm353_vm0, %v696_v20, 0.0  ;;  %v707_v24 = vsel %vm353_vm0, %v697_v23, 0.0  ;;  %1980 = vmatpush3.bf16.msra.mxu1 %v2010_v8  ;;  %1962 = vmatprep.subr.bf16.mxu0 %v2011_v13  ;;  %3517 = vst [vmem:[#allocation23_spill] sm:$0xff] %v2459_v41  ;;  %3518 = vst [vmem:[#allocation24_spill] sm:$0xff] %v2465_v55 }
 0x144   : > { %v704_v2 = vadd.f32 %v703_v0, %v702_v63  ;;  %1977 = vmatprep.subr.bf16.mxu1 %v2011_v13  ;;  %v709_v50 = vsel %vm353_vm0, %v698_v34, 0.0  ;;  %v711_v7 = vsel %vm353_vm0, %v699_v39, 0.0  ;;  %v713_v59 = vsel %vm353_vm0, %v700_v32, 0.0  ;;  %v2472_v9 = vpop.permute.xlu1 %1157 }
 0x145   : > { %v715_v61 = vsel %vm353_vm0, %v701_v36, 0.0  ;;  %v2470_v5 = vpop.permute.xlu0 %1153  ;;  %3521 = vst [vmem:[#allocation27_spill] sm:$0xff] %v2472_v9  ;;  %v2481_v18 = vsub.s32 1, %v2171_v6  ;;  %v922_v20 = vsub.s32 2, %v2171_v6  ;;  %v3433_v22 = vsub.s32 7, %v2171_v6 }
 0x146   : > { %v706_v21 = vadd.f32 %v705_v17, %v704_v2  ;;  %1963 = vmatpush3.bf16.msra.mxu0 %v2011_v13  ;;  %3520 = vst [vmem:[#allocation26_spill] sm:$0xff] %v2470_v5  ;;  %v1078_v34 = vsub.s32 6, %v2171_v6  ;;  %v2493_v36 = vsub.s32 0, %v2171_v6  ;;  %v3436_v2 = vsub.s32 5, %v2171_v6 }
 0x147   : > { %1981 = vmatpush3.bf16.msra.mxu1 %v2011_v13  ;;  %1964 = vmatprep.subr.bf16.mxu0 %v2012_v43  ;;  %3525 = vst [vmem:[#allocation31_spill] sm:$0xff] %v2481_v18  ;;  %v3437_v8 = vsub.s32 3, %v2171_v6  ;;  %v2504_v13 = vld [vmem:[%s3428_s4 + $0x8] sm:$0xff]  ;;  %v2508_v17 = vrot.slane %v2193_v11, %v2481_v18 }
 0x148   : > { %v708_v48 = vadd.f32 %v707_v24, %v706_v21  ;;  %1978 = vmatprep.subr.bf16.mxu1 %v2012_v43  ;;  %v2476_v15 = vpop.permute.xlu1 %1149  ;;  %3527 = vst [vmem:[#allocation33_spill] sm:$0xff] %v2493_v36  ;;  %3528 = vst [vmem:[#allocation34_spill] sm:$0xff] %v2504_v13  ;;  %v2513_v21 = vrot.slane %v2193_v11, %v3433_v22  ;;  %v2553_v22 = vrot.slane %v2504_v13, %v1078_v34 }
 0x149   : > { %v2474_v10 = vpop.permute.xlu0 %1133  ;;  %3523 = vst [vmem:[#allocation29_spill] sm:$0xff] %v2476_v15 }
 0x14a   : > { %v710_v51 = vadd.f32 %v709_v50, %v708_v48  ;;  %1965 = vmatpush3.bf16.msra.mxu0 %v2012_v43  ;;  %3522 = vst [vmem:[#allocation28_spill] sm:$0xff] %v2474_v10  ;;  %v2528_v50 = vrot.slane %v2193_v11, %v922_v20  ;;  %3532 = vst [vmem:[#allocation38_spill] sm:$0xff] %v2553_v22 }
 0x14b   : > { %1982 = vmatpush3.bf16.msra.mxu1 %v2012_v43  ;;  %1966 = vmatprep.subr.bf16.mxu0 %v2013_v56 }
 0x14c   : > { %v712_v38 = vadd.f32 %v711_v7, %v710_v51  ;;  %1979 = vmatprep.subr.bf16.mxu1 %v2013_v56  ;;  %v2532_v51 = vrot.slane %v2504_v13, %v2481_v18  ;;  %v2535_v7 = vrot.slane %v2504_v13, %v922_v20  ;;  %v2558_v20 = vrot.slane %v2193_v11, %v3436_v2 }
 0x14e   : > { %v714_v54 = vadd.f32 %v713_v59, %v712_v38  ;;  %1967 = vmatpush3.bf16.msra.mxu0 %v2013_v56  ;;  %3529 = vst [vmem:[#allocation35_spill] sm:$0xff] %v2532_v51  ;;  %3530 = vst [vmem:[#allocation36_spill] sm:$0xff] %v2535_v7  ;;  %v2538_v38 = vrot.slane %v2193_v11, %v1078_v34 }
 0x14f   : > { %1983 = vmatpush3.bf16.msra.mxu1 %v2013_v56  ;;  %v2543_v56 = vrot.slane %v2504_v13, %v994_v12  ;;  %v2564_v12 = vrot.slane %v2193_v11, %v3437_v8 }
 0x150   : > { %v2468_v1 = vadd.f32 %v715_v61, %v714_v54  ;;  %v2549_v54 = vrot.slane %v2193_v11, %v2493_v36 }
 0x151   : > { %3531 = vst [vmem:[#allocation37_spill] sm:$0xff] %v2543_v56 }
 0x152   : > { %3519 = vst [vmem:[#allocation25_spill] sm:$0xff] %v2468_v1 }
 0x15e   : > { %v2478_v16 = vpop.permute.xlu0 %744 }
 0x15f   : > { %3524 = vst [vmem:[#allocation30_spill] sm:$0xff] %v2478_v16  ;;  %v766_v39 = vrot.slane %v2478_v16, 7  ;;  %v3434_v63 = vrot.slane %v2478_v16, 1  ;;  %v2572_v34 = vmul.f32 %v2513_v21, %v2478_v16 }
 0x160   : > { %v2485_v23 = vpop.permute.xlu1 %746 }
 0x161   : > { %3526 = vst [vmem:[#allocation32_spill] sm:$0xff] %v2485_v23  ;;  %v3438_v28 = vrot.slane %v2485_v23, 7  ;;  %v3435_v32 = vrot.slane %v2485_v23, 1  ;;  %3533 = vst [vmem:[#allocation39_spill] sm:$0xff] %v2572_v34  ;;  %v1094_v11 = vmul.f32 %v2513_v21, %v2485_v23 }
 0x162   : > { %v2497_v0 = vpop.permute.xlu0 %740 }
 0x163   : > { %v844_v24 = vsel %vm839_vm1, %v3434_v63, %v3435_v32  ;;  %v779_v43 = vsel %vm774_vm2, %v766_v39, %v3438_v28  ;;  %v2568_v32 = vmul.f32 %v2508_v17, %v2478_v16  ;;  %v831_v8 = vrot.slane %v2497_v0, 1 }
 0x164   : > { %v2521_v48 = vpop.permute.xlu1 %1020  ;;  %v826_v61 = vmul.f32 %v2396_v58, %v779_v43  ;;  %v882_v63 = vmul.f32 %v2414_v26, %v844_v24  ;;  %v908_v43 = vmul.f32 %v2508_v17, %v2485_v23  ;;  %v2580_v24 = vrot.slane %v2504_v13, %v2493_v36 }
 0x165   : > { %v2590_v26 = vmul.f32 %v2508_v17, %v2497_v0  ;;  %v2601_v28 = vmul.f32 %v2513_v21, %v2497_v0 }
 0x166   : > { %v2545_v59 = vpop.permute.xlu0 %1016  ;;  %v896_v51 = vmul.f32 %v2549_v54, %v826_v61  ;;  %v1082_v22 = vmul.f32 %v2538_v38, %v826_v61  ;;  %v2597_v7 = vmul.f32 %v2558_v20, %v882_v63  ;;  %v2617_v44 = vmul.f32 %v2528_v50, %v882_v63 }
 0x167   : > { %3534 = vst [vmem:[#allocation40_spill] sm:$0xff] %v2590_v26  ;;  %3537 = vst [vmem:[#allocation43_spill] sm:$0xff] %v2601_v28  ;;  %v987_v10 = vmul.f32 %v2564_v12, %v826_v61  ;;  %v2621_v53 = vmul.f32 %v2580_v24, %v882_v63  ;;  %v3557_v28 = vrot.slane %v2485_v23, 1 }
 0x168   : > { %v2576_v2 = vpop.permute.xlu1 %742  ;;  %3536 = vst [vmem:[#allocation42_spill] sm:$0xff] %v2597_v7  ;;  %v2639_v63 = vadd.f32 %v1094_v11, %v1082_v22 }
 0x169   : > { %v3538_v1 = vrot.slane %v2576_v2, 7  ;;  %v3539_v18 = vrot.slane %v2576_v2, 1  ;;  %3542 = vst [vmem:[#allocation46_spill] sm:$0xff] %v2621_v53  ;;  %v2635_v29 = vmul.f32 %v2513_v21, %v2576_v2  ;;  %v2641_v53 = vadd.f32 %v908_v43, %v896_v51 }
 0x16a   : > { %v2592_v56 = vpop.permute.xlu0 %752  ;;  %v3551_v43 = vrot.slane %v2485_v23, 7 }
 0x16b   : > { %3535 = vst [vmem:[#allocation41_spill] sm:$0xff] %v2592_v56  ;;  %v780_v58 = vsel %vm774_vm2, %v3538_v1, %v766_v39  ;;  %v846_v36 = vsel %vm839_vm1, %v831_v8, %v3539_v18  ;;  %v2625_v1 = vmul.f32 %v2508_v17, %v2576_v2  ;;  %v3458_v39 = vrot.slane %v2592_v56, 7  ;;  %3545 = vst [vmem:[#allocation49_spill] sm:$0xff] %v2635_v29 }
 0x16c   : > { %v2612_v13 = vmul.f32 %v2369_v25, %v780_v58  ;;  %v2614_v15 = vpop.permute.xlu1 %754  ;;  %v2631_v25 = vmul.f32 %v2424_v27, %v846_v36  ;;  %v3547_v58 = vrot.slane %v2497_v0, 7  ;;  %v2661_v11 = vmul.f32 %v2508_v17, %v2592_v56 }
 0x16d   : > { %3541 = vst [vmem:[#allocation45_spill] sm:$0xff] %v2614_v15  ;;  %3543 = vst [vmem:[#allocation47_spill] sm:$0xff] %v2625_v1  ;;  %v771_v18 = vrot.slane %v2614_v15, 7  ;;  %v3548_v27 = vrot.slane %v2614_v15, 1 }
 0x16e   : > { %3540 = vst [vmem:[#allocation44_spill] sm:$0xff] %v2612_v13  ;;  %3544 = vst [vmem:[#allocation48_spill] sm:$0xff] %v2631_v25  ;;  %v2637_v61 = vpop.permute.xlu0 %748  ;;  %v986_v51 = vmul.f32 %v2564_v12, %v2612_v13 }
 0x16f   : > { %3546 = vst [vmem:[#allocation50_spill] sm:$0xff] %v2637_v61  ;;  %v775_v26 = vsel %vm774_vm2, %v3458_v39, %v771_v18  ;;  %v782_v36 = vsel %vm774_vm2, %v771_v18, %v3547_v58  ;;  %v847_v34 = vsel %vm839_vm1, %v3548_v27, %v831_v8  ;;  %v768_v22 = vrot.slane %v2637_v61, 7 }
 0x170   : > { %v2664_v39 = vmul.f32 %v2400_v62, %v775_v26  ;;  %v2666_v18 = vpop.permute.xlu1 %750  ;;  %v2670_v58 = vmul.f32 %v2513_v21, %v2592_v56  ;;  %v2673_v27 = vmul.f32 %v2392_v49, %v782_v36  ;;  %v904_v8 = vmul.f32 %v2508_v17, %v2614_v15 }
 0x171   : > { %3549 = vst [vmem:[#allocation51_spill] sm:$0xff] %v2666_v18  ;;  %v778_v29 = vsel %vm774_vm2, %v3551_v43, %v768_v22  ;;  %v1052_v26 = vmul.f32 %v2558_v20, %v2631_v25  ;;  %v2684_v62 = vmul.f32 %v2410_v19, %v847_v34  ;;  %v895_v36 = vmul.f32 %v2549_v54, %v2612_v13 }
 0x172   : > { %3550 = vst [vmem:[#allocation52_spill] sm:$0xff] %v2670_v58  ;;  %v1098_v58 = vmul.f32 %v2513_v21, %v2614_v15  ;;  %v892_v49 = vmul.f32 %v2549_v54, %v2664_v39  ;;  %v2693_v37 = vmul.f32 %v2407_v14, %v778_v29  ;;  %v835_v43 = vrot.slane %v2637_v61, 1 }
 0x173   : > { %v769_v7 = vrot.slane %v2666_v18, 7  ;;  %v2698_v1 = vadd.f32 %v2521_v48, %v986_v51  ;;  %v2702_v34 = vmul.f32 %v2508_v17, %v2637_v61  ;;  %v836_v19 = vrot.slane %v2666_v18, 1 }
 0x174   : > { %3552 = vst [vmem:[#allocation53_spill] sm:$0xff] %v2693_v37  ;;  %v2707_v13 = vmul.f32 %v2580_v24, %v2631_v25  ;;  %v984_v29 = vmul.f32 %v2564_v12, %v2673_v27  ;;  %v1086_v14 = vmul.f32 %v2538_v38, %v2664_v39  ;;  %v1083_v48 = vmul.f32 %v2538_v38, %v2693_v37 }
 0x175   : > { %3553 = vst [vmem:[#allocation54_spill] sm:$0xff] %v2698_v1  ;;  %3554 = vst [vmem:[#allocation55_spill] sm:$0xff] %v2702_v34  ;;  %v777_v51 = vsel %vm774_vm2, %v768_v22, %v769_v7  ;;  %v924_v34 = vmul.f32 %v2528_v50, %v2684_v62  ;;  %v1095_v1 = vmul.f32 %v2513_v21, %v2637_v61  ;;  %v3556_v25 = vrot.slane %v2592_v56, 1 }
 0x176   : > { %3555 = vst [vmem:[#allocation56_spill] sm:$0xff] %v2707_v13  ;;  %v2722_v9 = vmul.f32 %v2375_v33, %v777_v51  ;;  %v1023_v13 = vpop.permute.xlu0 %1022  ;;  %v912_v57 = vadd.f32 %v904_v8, %v892_v49  ;;  %v842_v3 = vsel %vm839_vm1, %v835_v43, %v836_v19  ;;  %v843_v61 = vsel %vm839_vm1, %v3557_v28, %v835_v43 }
 0x177   : > { %v841_v41 = vsel %vm839_vm1, %v836_v19, %v3556_v25  ;;  %v2738_v51 = vmul.f32 %v2417_v31, %v842_v3  ;;  %v1096_v25 = vmul.f32 %v2513_v21, %v2666_v18  ;;  %v883_v49 = vmul.f32 %v2398_v60, %v843_v61 }
 0x178   : > { %v2731_v22 = vmul.f32 %v2403_v4, %v841_v41  ;;  %v1084_v33 = vmul.f32 %v2538_v38, %v2722_v9  ;;  %v1103_v19 = vadd.f32 %v1095_v1, %v1083_v48  ;;  %v915_v41 = vadd.f32 %v2568_v32, %v895_v36  ;;  %v1025_v4 = vpop.permute.xlu1 %1024 }
 0x179   : > { %3558 = vst [vmem:[#allocation57_spill] sm:$0xff] %v2738_v51  ;;  %v1043_v8 = vadd.f32 %v1023_v13, %v987_v10  ;;  %v988_v23 = vmul.f32 %v2564_v12, %v2693_v37  ;;  %v1040_v28 = vadd.f32 %v2545_v59, %v984_v29  ;;  %v1055_v43 = vmul.f32 %v2558_v20, %v883_v49 }
 0x17a   : > { %v1104_v3 = vadd.f32 %v1096_v25, %v1084_v33  ;;  %v1116_v31 = vmul.f32 %v2580_v24, %v2731_v22  ;;  %v935_v21 = vadd.f32 %v2617_v44, %v915_v41  ;;  %v1115_v1 = vmul.f32 %v2580_v24, %v2738_v51 }
 0x17b   : > { %v928_v32 = vmul.f32 %v2528_v50, %v883_v49  ;;  %v1056_v10 = vmul.f32 %v2558_v20, %v2738_v51  ;;  %v1106_v13 = vadd.f32 %v1098_v58, %v1086_v14  ;;  %v1063_v61 = vadd.f32 %v1055_v43, %v1043_v8 }
 0x17c   : > { %v1124_v36 = vadd.f32 %v1116_v31, %v1104_v3  ;;  %v1044_v59 = vadd.f32 %v1025_v4, %v988_v23  ;;  %v910_v33 = vmul.f32 %v2508_v17, %v2666_v18  ;;  %v975_v29 = vmul.f32 %v2426_v46, %v935_v21 }
 0x17d   : > { %v1123_v48 = vadd.f32 %v1115_v1, %v1103_v19  ;;  %v936_v44 = vadd.f32 %v928_v32, %v2641_v53  ;;  %v932_v25 = vadd.f32 %v924_v34, %v912_v57  ;;  %v1060_v41 = vadd.f32 %v1052_v26, %v1040_v28  ;;  %v1029_v19 = vpop.permute.xlu0 %1028 }
 0x17e   : > { %v1064_v60 = vadd.f32 %v1056_v10, %v1044_v59  ;;  %v3559_v37 = vrot.slane %v2592_v56, 7  ;;  %v1071_v14 = vadd.f32 %v1063_v61, %v975_v29  ;;  %v1164_v23 = vmul.f32 %v2465_v55, %v1124_v36 }
 0x17f   : > { %v1163_v31 = vmul.f32 %v2450_v40, %v1123_v48  ;;  %v976_v4 = vmul.f32 %v2432_v45, %v936_v44  ;;  %v1114_v17 = vmul.f32 %v2580_v24, %v883_v49  ;;  %v3560_v57 = vrot.slane %v2614_v15, 1  ;;  %v2789_v49 = vld [vmem:[%s3429_s5 + $0x1] ss:$0 sm:$0xff] }
 0x180   : > { %v776_v51 = vsel %vm774_vm2, %v769_v7, %v3559_v37  ;;  %v3561_v53 = vrot.slane %v2592_v56, 1  ;;  %v898_v37 = vmul.f32 %v2549_v54, %v2722_v9  ;;  %v930_v43 = vmul.f32 %v2528_v50, %v2731_v22  ;;  %v3582_v56 = vld [vmem:[#allocation46_spill] sm:$0xff] }
 0x181   : > { %v2771_v58 = vmul.f32 %v2380_v42, %v776_v51  ;;  %v1171_v7 = vadd.f32 %v1163_v31, %v1071_v14  ;;  %v1072_v34 = vadd.f32 %v1064_v60, %v976_v4  ;;  %v1118_v51 = vmul.f32 %v2580_v24, %v2684_v62  ;;  %v1031_v31 = vpop.permute.xlu1 %1030 }
 0x182   : > { %v840_v26 = vsel %vm839_vm1, %v3561_v53, %v3560_v57  ;;  %v918_v3 = vadd.f32 %v910_v33, %v898_v37  ;;  %v972_v29 = vmul.f32 %v2428_v47, %v932_v25  ;;  %v1122_v48 = vadd.f32 %v1114_v17, %v2639_v63 }
 0x183   : > { %v2782_v8 = vmul.f32 %v2420_v35, %v840_v26  ;;  %v899_v28 = vmul.f32 %v2549_v54, %v2771_v58  ;;  %v990_v60 = vmul.f32 %v2564_v12, %v2771_v58  ;;  %v2798_v21 = vadd.f32 %v2789_v49, %v1171_v7 }
 0x184   : > { %v1172_v1 = vadd.f32 %v1164_v23, %v1072_v34  ;;  %v1126_v10 = vadd.f32 %v1118_v51, %v1106_v13  ;;  %v938_v61 = vadd.f32 %v930_v43, %v918_v3  ;;  %v1059_v63 = vmul.f32 %v2558_v20, %v2684_v62 }
 0x185   : > { %v1058_v32 = vmul.f32 %v2558_v20, %v2782_v8  ;;  %v1046_v36 = vadd.f32 %v1029_v19, %v990_v60  ;;  %v919_v59 = vadd.f32 %v2661_v11, %v899_v28  ;;  %v931_v33 = vmul.f32 %v2528_v50, %v2782_v8 }
 0x186   : > { %v1199_v44 = vmul.f32 0.044715, %v2798_v21  ;;  %v2809_v14 = vadd.f32 %v2789_v49, %v1172_v1  ;;  %v978_v4 = vmul.f32 %v2430_v52, %v938_v61  ;;  %v991_v11 = vmul.f32 %v2564_v12, %v2664_v39  ;;  %v3566_v1 = vld [vmem:[#allocation43_spill] sm:$0xff]  ;;  %v3567_v61 = vld [vmem:[#allocation2_spill] sm:$0xff] }
 0x187   : > { %v1066_v13 = vadd.f32 %v1058_v32, %v1046_v36  ;;  %v939_v23 = vadd.f32 %v931_v33, %v919_v59  ;;  %v1166_v25 = vmul.f32 %v2470_v5, %v1126_v10  ;;  %v1087_v37 = vmul.f32 %v2538_v38, %v2673_v27 }
 0x188   : > { %v1207_v57 = vmul.f32 %v1199_v44, %v2798_v21  ;;  %v1200_v53 = vmul.f32 0.044715, %v2809_v14  ;;  %v1047_v7 = vadd.f32 %v1031_v31, %v991_v11  ;;  %v3562_v19 = vrot.slane %v2576_v2, 7  ;;  %v3568_v31 = vld [vmem:[#allocation6_spill] sm:$0xff] }
 0x189   : > { %v1074_v17 = vadd.f32 %v1066_v13, %v978_v4  ;;  %v979_v26 = vmul.f32 %v2438_v30, %v939_v23  ;;  %v3563_v51 = vrot.slane %v2497_v0, 7  ;;  %v3564_v62 = vrot.slane %v2478_v16, 1  ;;  %v3569_v23 = vld [vmem:[#allocation56_spill] sm:$0xff] }
 0x18a   : > { %v1215_v34 = vmul.f32 %v1207_v57, %v2798_v21  ;;  %v1208_v39 = vmul.f32 %v1200_v53, %v2809_v14  ;;  %v3565_v3 = vrot.slane %v2576_v2, 1  ;;  %v1107_v32 = vadd.f32 %v3566_v1, %v1087_v37 }
 0x18b   : > { %v781_v28 = vsel %vm774_vm2, %v3563_v51, %v3562_v19  ;;  %v1174_v60 = vadd.f32 %v1166_v25, %v1074_v17  ;;  %v1067_v10 = vadd.f32 %v1059_v63, %v1047_v7  ;;  %v1068_v59 = vadd.f32 %v1060_v41, %v972_v29  ;;  %v3570_v25 = vld [vmem:[#allocation23_spill] sm:$0xff]  ;;  %v3571_v7 = vld [vmem:[#allocation48_spill] sm:$0xff] }
 0x18c   : > { %v845_v43 = vsel %vm839_vm1, %v3565_v3, %v3564_v62  ;;  %v824_v36 = vmul.f32 %v3567_v61, %v781_v28  ;;  %v1223_v33 = vadd.f32 %v1215_v34, %v2798_v21  ;;  %v1216_v44 = vmul.f32 %v1208_v39, %v2809_v14  ;;  %v3572_v34 = vld [vmem:[#allocation27_spill] sm:$0xff] }
 0x18d   : > { %v881_v4 = vmul.f32 %v3568_v31, %v845_v43  ;;  %v1186_v13 = vadd.f32 %v2789_v49, %v1174_v60  ;;  %v1127_v11 = vadd.f32 %v3569_v23, %v1107_v32  ;;  %v1075_v57 = vadd.f32 %v1067_v10, %v979_v26  ;;  %v3573_v19 = vld [vmem:[#allocation47_spill] sm:$0xff]  ;;  %v1019_v32 = vpop.permute.xlu0 %1018  ;;  %v3574_v10 = vld [vmem:[#allocation54_spill] sm:$0xff]  ;;  %v3576_v23 = vld [vmem:[#allocation44_spill] sm:$0xff] }
 0x18e   : > { %v894_v53 = vmul.f32 %v2549_v54, %v824_v36  ;;  %v1162_v17 = vmul.f32 %v3570_v25, %v1122_v48  ;;  %v1231_v37 = vmul.f32 0.7978846, %v1223_v33  ;;  %v1224_v63 = vadd.f32 %v1216_v44, %v2809_v14  ;;  %v3575_v33 = vld [vmem:[#allocation42_spill] sm:$0xff] }
 0x18f   : > { %v925_v41 = vmul.f32 %v2528_v50, %v3571_v7  ;;  %v1202_v29 = vmul.f32 0.044715, %v1186_v13  ;;  %v1167_v39 = vmul.f32 %v3572_v34, %v1127_v11  ;;  %v926_v28 = vmul.f32 %v2528_v50, %v881_v4  ;;  %v3577_v7 = vld [vmem:[#allocation15_spill] sm:$0xff] }
 0x190   : > { %v914_v51 = vadd.f32 %v3573_v19, %v894_v53  ;;  %2050 = vtanh.f32 %v1231_v37  ;;  %v1232_v62 = vmul.f32 0.7978846, %v1224_v63  ;;  %v985_v26 = vmul.f32 %v2564_v12, %v824_v36 }
 0x191   : > { %v1053_v3 = vmul.f32 %v2558_v20, %v881_v4  ;;  %v1210_v48 = vmul.f32 %v1202_v29, %v1186_v13  ;;  %v1175_v43 = vadd.f32 %v1167_v39, %v1075_v57  ;;  %v1080_v1 = vmul.f32 %v2538_v38, %v824_v36  ;;  %v3578_v29 = vld [vmem:[#allocation49_spill] sm:$0xff]  ;;  %v3579_v36 = vld [vmem:[#allocation39_spill] sm:$0xff] }
 0x192   : > { %v934_v60 = vadd.f32 %v926_v28, %v914_v51  ;;  %2052 = vtanh.f32 %v1232_v62  ;;  %v1062_v44 = vadd.f32 %v3575_v33, %v3574_v10  ;;  %v1081_v11 = vmul.f32 %v2538_v38, %v3576_v23  ;;  %v3580_v28 = vld [vmem:[#allocation40_spill] sm:$0xff] }
 0x193   : > { %v893_v53 = vmul.f32 %v2549_v54, %v2673_v27  ;;  %v1218_v37 = vmul.f32 %v1210_v48, %v1186_v13  ;;  %v2861_v63 = vadd.f32 %v2789_v49, %v1175_v43  ;;  %v1100_v39 = vadd.f32 %v3578_v29, %v1080_v1  ;;  %v3581_v27 = vld [vmem:[#allocation53_spill] sm:$0xff]  ;;  %v3586_v29 = vld [vmem:[#allocation28_spill] sm:$0xff] }
 0x194   : > { %v974_v57 = vmul.f32 %v3577_v7, %v934_v60  ;;  %v1101_v19 = vadd.f32 %v3579_v36, %v1081_v11  ;;  %v1112_v51 = vmul.f32 %v2580_v24, %v881_v4  ;;  %v1041_v10 = vadd.f32 %v1019_v32, %v985_v26 }
 0x195   : > { %v913_v62 = vadd.f32 %v3580_v28, %v893_v53  ;;  %v1226_v33 = vadd.f32 %v1218_v37, %v1186_v13  ;;  %v1203_v23 = vmul.f32 0.044715, %v2861_v63  ;;  %v897_v48 = vmul.f32 %v2549_v54, %v3581_v27 }
 0x196   : > { %v1070_v15 = vadd.f32 %v1062_v44, %v974_v57  ;;  %v1120_v43 = vadd.f32 %v1112_v51, %v1100_v39  ;;  %v1121_v18 = vadd.f32 %v3582_v56, %v1101_v19  ;;  %v1061_v34 = vadd.f32 %v1053_v3, %v1041_v10  ;;  %v3583_v44 = vld [vmem:[#allocation20_spill] sm:$0xff]  ;;  %v3584_v57 = vld [vmem:[#allocation19_spill] sm:$0xff] }
 0x197   : > { %v933_v60 = vadd.f32 %v925_v41, %v913_v62  ;;  %v1085_v1 = vmul.f32 %v2538_v38, %v2771_v58  ;;  %v1234_v11 = vmul.f32 0.7978846, %v1226_v33  ;;  %v1211_v4 = vmul.f32 %v1203_v23, %v2861_v63  ;;  %v3585_v3 = vld [vmem:[#allocation55_spill] sm:$0xff] }
 0x198   : > { %v1170_v53 = vadd.f32 %v1162_v17, %v1070_v15  ;;  %v1191_v26 = vmul.f32 0.5, %v2798_v21  ;;  %v1192_v32 = vmul.f32 0.5, %v2809_v14  ;;  %v1160_v37 = vmul.f32 %v3583_v44, %v1120_v43  ;;  %v3587_v21 = vld [vmem:[#allocation57_spill] sm:$0xff] }
 0x199   : > { %v973_v54 = vmul.f32 %v3584_v57, %v933_v60  ;;  %2054 = vtanh.f32 %v1234_v11  ;;  %v1219_v56 = vmul.f32 %v1211_v4, %v2861_v63  ;;  %v917_v38 = vadd.f32 %v3585_v3, %v897_v48 }
 0x19a   : > { %v2881_v41 = vadd.f32 %v2789_v49, %v1170_v53  ;;  %v2051_v58 = vpop.eup %2050  ;;  %v1161_v39 = vmul.f32 %v3586_v29, %v1121_v18  ;;  %v1168_v17 = vadd.f32 %v1160_v37, %v1068_v59  ;;  %v929_v14 = vmul.f32 %v2528_v50, %v3587_v21  ;;  %v3588_v18 = vld [vmem:[#allocation52_spill] sm:$0xff]  ;;  %v3590_v21 = vld [vmem:[#allocation29_spill] sm:$0xff] }
 0x19b   : > { %v1069_v15 = vadd.f32 %v1061_v34, %v973_v54  ;;  %v1247_v36 = vadd.f32 1.0, %v2051_v58  ;;  %v1194_v19 = vmul.f32 0.5, %v1186_v13  ;;  %v1227_v51 = vadd.f32 %v1219_v56, %v2861_v63  ;;  %v2899_v13 = vld [vmem:[%s3429_s5 + $0x4] ss:$0 sm:$0xff] }
 0x19c   : > { %v1198_v28 = vmul.f32 0.044715, %v2881_v41  ;;  %v2053_v62 = vpop.eup %2052  ;;  %v2890_v33 = vadd.f32 %v2789_v49, %v1168_v17  ;;  %v989_v23 = vmul.f32 %v2564_v12, %v2722_v9  ;;  %v1105_v34 = vadd.f32 %v3588_v18, %v1085_v1  ;;  %v1027_v12 = vpop.permute.xlu1 %1026 }
 0x19d   : > { %v1169_v10 = vadd.f32 %v1161_v39, %v1069_v15  ;;  %v1255_v59 = vmul.f32 %v1247_v36, %v1191_v26  ;;  %v1248_v27 = vadd.f32 1.0, %v2053_v62  ;;  %v1235_v48 = vmul.f32 0.7978846, %v1227_v51  ;;  %v2910_v26 = vld [vmem:[%s3429_s5 + $0x5] ss:$0 sm:$0xff] }
 0x19e   : > { %v1206_v50 = vmul.f32 %v1198_v28, %v2881_v41  ;;  %v1196_v60 = vmul.f32 0.044715, %v2890_v33  ;;  %v937_v11 = vadd.f32 %v929_v14, %v917_v38  ;;  %v1117_v9 = vmul.f32 %v2580_v24, %v2782_v8  ;;  %v3589_v15 = vld [vmem:[#allocation22_spill] sm:$0xff]  ;;  %v731_v62 = vld [vmem:[%s3428_s4 + $0x10] sm:$0x3] }
 0x19f   : > { %v1181_v43 = vadd.f32 %v2789_v49, %v1169_v10  ;;  %v1267_v1 = vmul.f32 %v2899_v13, %v1255_v59  ;;  %v1256_v4 = vmul.f32 %v1248_v27, %v1192_v32  ;;  %2056 = vtanh.f32 %v1235_v48 }
 0x1a0   : > { %v1214_v53 = vmul.f32 %v1206_v50, %v2881_v41  ;;  %v1204_v54 = vmul.f32 %v1196_v60, %v2890_v33  ;;  %v1057_v56 = vmul.f32 %v2558_v20, %v2731_v22  ;;  %v1125_v3 = vadd.f32 %v1117_v9, %v1105_v34  ;;  %v3592_v60 = vld [vmem:[#allocation34_spill] sm:$0xff] }
 0x1a1   : > { %v1197_v37 = vmul.f32 0.044715, %v1181_v43  ;;  %v2916_v24 = vadd.f32 %v2910_v26, %v1267_v1  ;;  %v1268_v8 = vmul.f32 %v2899_v13, %v1256_v4  ;;  %v1045_v38 = vadd.f32 %v1027_v12, %v989_v23  ;;  %v3593_v4 = vld [vmem:[#allocation33_spill] sm:$0xff] }
 0x1a2   : > { %v1222_v32 = vadd.f32 %v1214_v53, %v2881_v41  ;;  %v1212_v39 = vmul.f32 %v1204_v54, %v2890_v33  ;;  %v977_v17 = vmul.f32 %v3589_v15, %v937_v11  ;;  %v1165_v14 = vmul.f32 %v3590_v21, %v1125_v3  ;;  %v3611_v21 = vld [vmem:[#allocation9_spill] sm:$0xff] }
 0x1a3   : > { %v1205_v58 = vmul.f32 %v1197_v37, %v1181_v43  ;;  %v2055_v36 = vpop.eup %2054  ;;  %v3484_v51 = vrot.slane %v2916_v24, 7  ;;  %v2925_v20 = vadd.f32 %v2910_v26, %v1268_v8  ;;  %v1065_v28 = vadd.f32 %v1057_v56, %v1045_v38  ;;  %v3594_v8 = vld [vmem:[#allocation11_spill] sm:$0xff] }
 0x1a4   : > { %v1230_v22 = vmul.f32 0.7978846, %v1222_v32  ;;  %v1250_v10 = vadd.f32 1.0, %v2055_v36  ;;  %v1220_v18 = vadd.f32 %v1212_v39, %v2890_v33  ;;  %v3483_v34 = vrot.slane %v2916_v24, 1 }
 0x1a5   : > { %v1213_v23 = vmul.f32 %v1205_v58, %v1181_v43  ;;  %v3481_v59 = vrot.slane %v2925_v20, 7  ;;  %v3482_v27 = vrot.slane %v2925_v20, 1  ;;  %v1073_v48 = vadd.f32 %v1065_v28, %v977_v17  ;;  %v3595_v58 = vld [vmem:[#allocation31_spill] sm:$0xff] }
 0x1a6   : > { %2058 = vtanh.f32 %v1230_v22  ;;  %v3591_v50 = vsub.s32 7, %v2171_v6  ;;  %v1258_v9 = vmul.f32 %v1250_v10, %v1194_v19  ;;  %v1228_v1 = vmul.f32 0.7978846, %v1220_v18  ;;  %v3599_v18 = vld [vmem:[#allocation8_spill] sm:$0xff] }
 0x1a7   : > { %v1221_v12 = vadd.f32 %v1213_v23, %v1181_v43  ;;  %v2940_v53 = vrot.slane %v731_v62, %v3593_v4  ;;  %v1173_v37 = vadd.f32 %v1165_v14, %v1073_v48  ;;  %v1319_v54 = vsel %vm839_vm1, %v3483_v34, %v3482_v27  ;;  %v3604_v4 = vld [vmem:[#allocation37_spill] sm:$0xff] }
 0x1a8   : > { %v2937_v11 = vrot.slane %v3592_v60, %v3591_v50  ;;  %v1295_v19 = vsel %vm774_vm2, %v3484_v51, %v3481_v59  ;;  %v1270_v56 = vmul.f32 %v2899_v13, %v1258_v9  ;;  %2060 = vtanh.f32 %v1228_v1 }
 0x1a9   : > { %v1229_v3 = vmul.f32 0.7978846, %v1221_v12  ;;  %v1304_v32 = vmul.f32 %v1295_v19, %v3594_v8  ;;  %v2057_v38 = vpop.eup %2056  ;;  %v2957_v39 = vrot.slane %v731_v62, %v3595_v58  ;;  %v3596_v17 = vsub.s32 5, %v2171_v6 }
 0x1aa   : > { %v3598_v36 = vsub.s32 3, %v2171_v6  ;;  %v1185_v28 = vadd.f32 %v2789_v49, %v1173_v37  ;;  %v1195_v10 = vmul.f32 0.5, %v2861_v63  ;;  %v1251_v23 = vadd.f32 1.0, %v2057_v38 }
 0x1ab   : > { %v2962_v14 = vrot.slane %v3592_v60, %v3596_v17  ;;  %2062 = vtanh.f32 %v1229_v3  ;;  %v1327_v48 = vmul.f32 %v1319_v54, %v3599_v18  ;;  %v2973_v62 = vadd.f32 %v2910_v26, %v1270_v56 }
 0x1ac   : > { %v2967_v22 = vrot.slane %v3592_v60, %v3598_v36  ;;  %v1190_v50 = vmul.f32 0.5, %v2881_v41  ;;  %v1201_v9 = vmul.f32 0.044715, %v1185_v28  ;;  %v1459_v12 = vmul.f32 %v2937_v11, %v1304_v32  ;;  %v3600_v41 = vld [vmem:[#allocation36_spill] sm:$0xff] }
 0x1ad   : > { %3597 = vst [vmem:[#allocation43_spill] sm:$0xff] %v2962_v14  ;;  %v1259_v1 = vmul.f32 %v1251_v23, %v1195_v10  ;;  %v1188_v60 = vmul.f32 0.5, %v2890_v33  ;;  %v1189_v19 = vmul.f32 0.5, %v1181_v43  ;;  %v2980_v49 = vmul.f32 %v2962_v14, %v2916_v24  ;;  %v3601_v43 = vld [vmem:[#allocation38_spill] sm:$0xff]  ;;  %v3602_v23 = vld [vmem:[#allocation35_spill] sm:$0xff] }
 0x1ae   : > { %v1209_v63 = vmul.f32 %v1201_v9, %v1185_v28  ;;  %v2984_v37 = vmul.f32 %v2940_v53, %v2916_v24  ;;  %v1471_v54 = vmul.f32 %v2940_v53, %v2925_v20  ;;  %v2990_v56 = vmul.f32 %v3600_v41, %v2916_v24 }
 0x1af   : > { %v1271_v3 = vmul.f32 %v2899_v13, %v1259_v1  ;;  %v2993_v33 = vmul.f32 0.5, %v1185_v28  ;;  %v2996_v8 = vmul.f32 %v3601_v43, %v1327_v48  ;;  %v2999_v38 = vmul.f32 %v2957_v39, %v1327_v48 }
 0x1b0   : > { %v2059_v58 = vpop.eup %2058  ;;  %v1217_v17 = vmul.f32 %v1209_v63, %v1185_v28  ;;  %v3002_v10 = vadd.f32 %v1471_v54, %v1459_v12  ;;  %v1341_v18 = vmul.f32 %v3602_v23, %v1304_v32  ;;  %v1353_v27 = vmul.f32 %v3600_v41, %v2925_v20 }
 0x1b1   : > { %v1283_v9 = vadd.f32 %v2910_v26, %v1271_v3  ;;  %v1246_v59 = vadd.f32 1.0, %v2059_v58  ;;  %v3010_v51 = vmul.f32 %v2967_v22, %v1327_v48  ;;  %v1400_v63 = vmul.f32 %v3604_v4, %v1304_v32 }
 0x1b2   : > { %v1225_v34 = vadd.f32 %v1217_v17, %v1185_v28  ;;  %v1412_v12 = vmul.f32 %v2962_v14, %v2925_v20  ;;  %v2061_v54 = vpop.eup %2060  ;;  %v3017_v3 = vmul.f32 %v2940_v53, %v2973_v62  ;;  %v3019_v30 = vadd.f32 %v1353_v27, %v1341_v18 }
 0x1b3   : > { %3603 = vst [vmem:[#allocation2_spill] sm:$0xff] %v3010_v51  ;;  %v1254_v36 = vmul.f32 %v1246_v59, %v1190_v50  ;;  %v1291_v5 = vrot.slane %v1283_v9, 7  ;;  %v1315_v52 = vrot.slane %v1283_v9, 1  ;;  %v1244_v58 = vadd.f32 1.0, %v2061_v54 }
 0x1b4   : > { %3605 = vst [vmem:[#allocation6_spill] sm:$0xff] %v3017_v3  ;;  %v1233_v1 = vmul.f32 0.7978846, %v1225_v34  ;;  %3606 = vst [vmem:[#allocation56_spill] sm:$0xff] %v3019_v30  ;;  %v3023_v28 = vmul.f32 %v3600_v41, %v2973_v62  ;;  %v3608_v17 = vrot.slane %v2973_v62, 7  ;;  %v3609_v50 = vrot.slane %v2973_v62, 1 }
 0x1b5   : > { %v2063_v32 = vpop.eup %2062  ;;  %v1266_v48 = vmul.f32 %v2899_v13, %v1254_v36  ;;  %v3036_v34 = vmul.f32 %v2962_v14, %v2973_v62  ;;  %v1252_v18 = vmul.f32 %v1244_v58, %v1188_v60  ;;  %v1348_v45 = vmul.f32 %v3600_v41, %v1283_v9 }
 0x1b6   : > { %3607 = vst [vmem:[#allocation23_spill] sm:$0xff] %v3023_v28  ;;  %v1292_v59 = vsel %vm774_vm2, %v3608_v17, %v1291_v5  ;;  %v1316_v54 = vsel %vm839_vm1, %v3609_v50, %v1315_v52  ;;  %v1245_v27 = vadd.f32 1.0, %v2063_v32  ;;  %2064 = vtanh.f32 %v1233_v1 }
 0x1b7   : > { %3610 = vst [vmem:[#allocation48_spill] sm:$0xff] %v3036_v34  ;;  %v3039_v55 = vmul.f32 %v1292_v59, %v3611_v21  ;;  %v1278_v36 = vadd.f32 %v2910_v26, %v1266_v48  ;;  %v3043_v17 = vadd.f32 %v1412_v12, %v1400_v63  ;;  %v3046_v3 = vmul.f32 %v2962_v14, %v1283_v9 }
 0x1b8   : > { %v1253_v50 = vmul.f32 %v1245_v27, %v1189_v19  ;;  %v1264_v28 = vmul.f32 %v2899_v13, %v1252_v18  ;;  %v1330_v60 = vmul.f32 %v1316_v54, %v2420_v35  ;;  %v3057_v63 = vmul.f32 %v2940_v53, %v1283_v9 }
 0x1b9   : > { %3612 = vst [vmem:[#allocation47_spill] sm:$0xff] %v3039_v55  ;;  %3613 = vst [vmem:[#allocation54_spill] sm:$0xff] %v3043_v17  ;;  %v1336_v32 = vmul.f32 %v3602_v23, %v3039_v55  ;;  %v1286_v1 = vrot.slane %v1278_v36, 7  ;;  %v1310_v21 = vrot.slane %v1278_v36, 1  ;;  %v3054_v58 = vmul.f32 %v3604_v4, %v3039_v55 }
 0x1ba   : > { %3614 = vst [vmem:[#allocation42_spill] sm:$0xff] %v3046_v3  ;;  %3616 = vst [vmem:[#allocation15_spill] sm:$0xff] %v3057_v63  ;;  %v1265_v12 = vmul.f32 %v2899_v13, %v1253_v50  ;;  %v3061_v19 = vadd.f32 %v2910_v26, %v1264_v28  ;;  %v3064_v48 = vmul.f32 %v2940_v53, %v1278_v36  ;;  %v3618_v35 = vrot.slane %v2916_v24, 7 }
 0x1bb   : > { %3615 = vst [vmem:[#allocation44_spill] sm:$0xff] %v3054_v58  ;;  %v3067_v59 = vmul.f32 %v3600_v41, %v1278_v36  ;;  %v3619_v27 = vrot.slane %v2916_v24, 1  ;;  %v1356_v18 = vadd.f32 %v1348_v45, %v1336_v32  ;;  %v3078_v28 = vmul.f32 %v2962_v14, %v1278_v36 }
 0x1bc   : > { %3617 = vst [vmem:[#allocation49_spill] sm:$0xff] %v3061_v19  ;;  %v1296_v54 = vsel %vm774_vm2, %v1286_v1, %v3618_v35  ;;  %v3081_v50 = vadd.f32 %v2910_v26, %v1265_v12  ;;  %v1284_v63 = vrot.slane %v3061_v19, 7  ;;  %v1308_v55 = vrot.slane %v3061_v19, 1  ;;  %v3621_v35 = vld [vmem:[#allocation13_spill] sm:$0xff] }
 0x1bd   : > { %v1320_v9 = vsel %vm839_vm1, %v1310_v21, %v3619_v27  ;;  %v3086_v3 = vmul.f32 %v2967_v22, %v1330_v60  ;;  %v1349_v24 = vmul.f32 %v3600_v41, %v3061_v19  ;;  %v1408_v45 = vmul.f32 %v2962_v14, %v3061_v19  ;;  %v3626_v19 = vld [vmem:[#allocation7_spill] sm:$0xff] }
 0x1be   : > { %v1326_v58 = vmul.f32 %v1320_v9, %v3621_v35  ;;  %v3094_v36 = vmul.f32 %v3601_v43, %v1330_v60  ;;  %v1285_v32 = vrot.slane %v3081_v50, 7  ;;  %v1299_v12 = vsel %vm774_vm2, %v1291_v5, %v1284_v63  ;;  %v3623_v9 = vld [vmem:[#allocation5_spill] sm:$0xff] }
 0x1bf   : > { %3620 = vst [vmem:[#allocation39_spill] sm:$0xff] %v3086_v3  ;;  %v1309_v27 = vrot.slane %v3081_v50, 1  ;;  %v1323_v34 = vsel %vm839_vm1, %v1315_v52, %v1308_v55  ;;  %v3103_v35 = vmul.f32 %v1299_v12, %v3623_v9  ;;  %v3624_v3 = vld [vmem:[#allocation12_spill] sm:$0xff]  ;;  %v3109_v15 = vmul.f32 %v1296_v54, %v3626_v19  ;;  %v3628_v54 = vld [vmem:[#allocation3_spill] sm:$0xff] }
 0x1c0   : > { %3622 = vst [vmem:[#allocation40_spill] sm:$0xff] %v3094_v36  ;;  %v3106_v17 = vmul.f32 %v1323_v34, %v3624_v3  ;;  %v3112_v36 = vmul.f32 %v2957_v39, %v1330_v60  ;;  %v2065_v51 = vpop.eup %2064  ;;  %v1297_v5 = vsel %vm774_vm2, %v1285_v32, %v1286_v1  ;;  %v1298_v16 = vsel %vm774_vm2, %v1284_v63, %v1285_v32  ;;  %v3629_v60 = vld [vmem:[#allocation16_spill] sm:$0xff] }
 0x1c1   : > { %v1321_v52 = vsel %vm839_vm1, %v1309_v27, %v1310_v21  ;;  %v1322_v3 = vsel %vm839_vm1, %v1308_v55, %v1309_v27  ;;  %v1249_v34 = vadd.f32 1.0, %v2065_v51  ;;  %v1301_v19 = vmul.f32 %v1298_v16, %v3567_v61 }
 0x1c2   : > { %3625 = vst [vmem:[#allocation53_spill] sm:$0xff] %v3106_v17  ;;  %3627 = vst [vmem:[#allocation46_spill] sm:$0xff] %v3112_v36  ;;  %v1302_v12 = vmul.f32 %v1297_v5, %v3628_v54  ;;  %v3125_v9 = vmul.f32 %v1322_v3, %v3629_v60  ;;  %v1325_v36 = vmul.f32 %v1321_v52, %v3568_v31 }
 0x1c3   : > { %v1337_v1 = vmul.f32 %v3602_v23, %v3103_v35  ;;  %v1368_v63 = vmul.f32 %v2967_v22, %v3106_v17  ;;  %v1396_v21 = vmul.f32 %v3604_v4, %v3103_v35  ;;  %v1257_v55 = vmul.f32 %v1249_v34, %v2993_v33 }
 0x1c4   : > { %v1369_v16 = vmul.f32 %v2967_v22, %v3125_v9  ;;  %v1371_v61 = vmul.f32 %v2967_v22, %v1326_v58  ;;  %v1409_v51 = vmul.f32 %v2962_v14, %v3081_v50  ;;  %v1338_v31 = vmul.f32 %v3602_v23, %v1301_v19 }
 0x1c5   : > { %v1357_v32 = vadd.f32 %v1349_v24, %v1337_v1  ;;  %v1376_v27 = vadd.f32 %v1368_v63, %v1356_v18  ;;  %v1397_v5 = vmul.f32 %v3604_v4, %v1301_v19  ;;  %v1269_v52 = vmul.f32 %v2899_v13, %v1257_v55 }
 0x1c6   : > { %v1339_v3 = vmul.f32 %v3602_v23, %v1302_v12  ;;  %v1416_v54 = vadd.f32 %v1408_v45, %v1396_v21  ;;  %v1428_v33 = vmul.f32 %v3601_v43, %v3125_v9  ;;  %v1429_v14 = vmul.f32 %v3601_v43, %v1325_v36 }
 0x1c7   : > { %v1377_v34 = vadd.f32 %v1369_v16, %v1357_v32  ;;  %v1384_v60 = vmul.f32 %v1376_v27, %v2428_v47  ;;  %v1417_v17 = vadd.f32 %v1409_v51, %v1397_v5  ;;  %v3149_v30 = vadd.f32 %v2910_v26, %v1269_v52 }
 0x1c8   : > { %v1370_v18 = vmul.f32 %v2967_v22, %v1325_v36  ;;  %v1436_v24 = vadd.f32 %v1428_v33, %v1416_v54  ;;  %v1456_v13 = vmul.f32 %v2937_v11, %v1301_v19  ;;  %v1398_v45 = vmul.f32 %v3604_v4, %v1302_v12  ;;  %v3631_v54 = vld [vmem:[#allocation14_spill] sm:$0xff] }
 0x1c9   : > { %v1385_v1 = vmul.f32 %v1377_v34, %v3584_v57  ;;  %v1437_v63 = vadd.f32 %v1429_v14, %v1417_v17  ;;  %v1457_v21 = vmul.f32 %v2937_v11, %v1302_v12  ;;  %v1313_v47 = vrot.slane %v3149_v30, 1 }
 0x1ca   : > { %v1430_v55 = vmul.f32 %v3601_v43, %v1326_v58  ;;  %v1444_v16 = vadd.f32 %v1436_v24, %v1384_v60  ;;  %v1468_v26 = vmul.f32 %v2940_v53, %v3081_v50  ;;  %v1488_v19 = vmul.f32 %v2957_v39, %v1325_v36 }
 0x1cb   : > { %v1445_v51 = vadd.f32 %v1437_v63, %v1385_v1  ;;  %v1477_v32 = vadd.f32 %v3064_v48, %v1457_v21  ;;  %v1489_v57 = vmul.f32 %v2957_v39, %v1326_v58  ;;  %v3630_v14 = vrot.slane %v2925_v20, 1 }
 0x1cc   : > { %v1476_v27 = vadd.f32 %v1468_v26, %v1456_v13  ;;  %v1350_v12 = vmul.f32 %v3600_v41, %v3081_v50  ;;  %v1359_v5 = vadd.f32 %v3067_v59, %v1339_v3  ;;  %v1399_v48 = vmul.f32 %v3604_v4, %v3109_v15  ;;  %v3182_v3 = vld [vmem:[%s3429_s5 + $0x2] ss:$0 sm:$0xff] }
 0x1cd   : > { %v1318_v17 = vsel %vm839_vm1, %v3630_v14, %v1313_v47  ;;  %v1497_v52 = vadd.f32 %v1489_v57, %v1477_v32  ;;  %v1418_v36 = vadd.f32 %v3078_v28, %v1398_v45  ;;  %v1458_v24 = vmul.f32 %v2937_v11, %v3109_v15 }
 0x1ce   : > { %v1328_v33 = vmul.f32 %v1318_v17, %v3631_v54  ;;  %v1496_v58 = vadd.f32 %v1488_v19, %v1476_v27  ;;  %v1358_v34 = vadd.f32 %v1350_v12, %v1338_v31  ;;  %v1379_v60 = vadd.f32 %v1371_v61, %v1359_v5  ;;  %v3635_v17 = vld [vmem:[#allocation4_spill] sm:$0xff] }
 0x1cf   : > { %v1505_v13 = vmul.f32 %v1497_v52, %v3586_v29  ;;  %v1419_v50 = vadd.f32 %v2980_v49, %v1399_v48  ;;  %v1438_v1 = vadd.f32 %v1430_v55, %v1418_v36  ;;  %v1478_v31 = vadd.f32 %v2984_v37, %v1458_v24  ;;  %v3193_v55 = vld [vmem:[%s3429_s5 + $0x3] ss:$0 sm:$0xff] }
 0x1d0   : > { %v1491_v59 = vmul.f32 %v2957_v39, %v1328_v33  ;;  %v1504_v28 = vmul.f32 %v1496_v58, %v3583_v44  ;;  %v1378_v45 = vadd.f32 %v1370_v18, %v1358_v34  ;;  %v1387_v61 = vmul.f32 %v1379_v60, %v2426_v46  ;;  %v3636_v52 = vld [vmem:[#allocation10_spill] sm:$0xff] }
 0x1d1   : > { %v1513_v63 = vadd.f32 %v1505_v13, %v1445_v51  ;;  %v1439_v29 = vadd.f32 %v2996_v8, %v1419_v50  ;;  %v1289_v21 = vrot.slane %v3149_v30, 7  ;;  %v1498_v46 = vadd.f32 %v2999_v38, %v1478_v31 }
 0x1d2   : > { %v1499_v49 = vadd.f32 %v1491_v59, %v3002_v10  ;;  %v1512_v26 = vadd.f32 %v1504_v28, %v1444_v16  ;;  %v1386_v44 = vmul.f32 %v1378_v45, %v3577_v7  ;;  %v3632_v37 = vrot.slane %v2973_v62, 1  ;;  %v3638_v59 = vld [vmem:[#allocation32_spill] sm:$0xff]  ;;  %v3639_v45 = vld [vmem:[#allocation43_spill] sm:$0xff] }
 0x1d3   : > { %v1525_v8 = vadd.f32 %v3182_v3, %v1513_v63  ;;  %v1447_v10 = vadd.f32 %v1439_v29, %v1387_v61  ;;  %v3633_v32 = vrot.slane %v2973_v62, 7  ;;  %v1506_v38 = vmul.f32 %v1498_v46, %v3570_v25  ;;  %v3641_v29 = vld [vmem:[#allocation2_spill] sm:$0xff] }
 0x1d4   : > { %v1317_v18 = vsel %vm839_vm1, %v1313_v47, %v3632_v37  ;;  %v1507_v51 = vmul.f32 %v1499_v49, %v2450_v40  ;;  %v1524_v16 = vadd.f32 %v3182_v3, %v1512_v26  ;;  %v1446_v7 = vadd.f32 %v1438_v1, %v1386_v44  ;;  %v3642_v26 = vld [vmem:[#allocation22_spill] sm:$0xff] }
 0x1d5   : > { %v1293_v19 = vsel %vm774_vm2, %v1289_v21, %v3633_v32  ;;  %v3634_v57 = vrot.slane %v2925_v20, 7  ;;  %v1537_v27 = vmul.f32 %v3193_v55, %v1525_v8  ;;  %v1329_v54 = vmul.f32 %v1317_v18, %v3636_v52 }
 0x1d6   : > { %v1515_v14 = vadd.f32 %v1507_v51, %v1447_v10  ;;  %v1306_v62 = vmul.f32 %v1293_v19, %v2380_v42  ;;  %v1536_v12 = vmul.f32 %v3193_v55, %v1524_v16  ;;  %v1514_v5 = vadd.f32 %v1506_v38, %v1446_v7  ;;  %v3644_v51 = vld [vmem:[#allocation23_spill] sm:$0xff]  ;;  %v3645_v7 = vld [vmem:[#allocation6_spill] sm:$0xff] }
 0x1d7   : > { %v1294_v47 = vsel %vm774_vm2, %v3634_v57, %v1289_v21  ;;  %v1340_v25 = vmul.f32 %v3602_v23, %v3109_v15  ;;  %v1463_v20 = vmul.f32 %v2937_v11, %v3103_v35  ;;  %v3224_v6 = vmul.f32 %v2957_v39, %v3125_v9 }
 0x1d8   : > { %v1305_v40 = vmul.f32 %v1294_v47, %v3635_v17  ;;  %v1545_v48 = vadd.f32 %v1537_v27, %v2576_v2  ;;  %v1527_v36 = vadd.f32 %v3182_v3, %v1515_v14  ;;  %v1544_v42 = vadd.f32 %v1536_v12, %v2497_v0  ;;  %v3637_v0 = vld [vmem:[#allocation56_spill] sm:$0xff]  ;;  %v3646_v47 = vld [vmem:[#allocation18_spill] sm:$0xff]  ;;  %v3647_v17 = vld [vmem:[#allocation39_spill] sm:$0xff] }
 0x1d9   : > { %v1526_v58 = vadd.f32 %v3182_v3, %v1514_v5  ;;  %v1360_v34 = vadd.f32 %v2990_v56, %v1340_v25  ;;  %v1373_v60 = vmul.f32 %v2967_v22, %v1328_v33  ;;  %v1343_v24 = vmul.f32 %v3602_v23, %v1306_v62  ;;  %v3650_v25 = vld [vmem:[#allocation44_spill] sm:$0xff] }
 0x1da   : > { %v1539_v15 = vmul.f32 %v3193_v55, %v1527_v36  ;;  %v1342_v35 = vmul.f32 %v3602_v23, %v1305_v40  ;;  %v1401_v9 = vmul.f32 %v3604_v4, %v1305_v40  ;;  %v1552_v13 = vpack.c.bf16 %v1545_v48, %v1544_v42  ;;  %v3640_v23 = vld [vmem:[#allocation30_spill] sm:$0xff] }
 0x1db   : > { %v1538_v2 = vmul.f32 %v3193_v55, %v1526_v58  ;;  %v1374_v50 = vmul.f32 %v2967_v22, %v1329_v54  ;;  %v1381_v1 = vadd.f32 %v1373_v60, %v3637_v0  ;;  %v1402_v56 = vmul.f32 %v3604_v4, %v1306_v62  ;;  %v3651_v48 = vld [vmem:[#allocation42_spill] sm:$0xff]  ;;  %v3653_v60 = vld [vmem:[#allocation47_spill] sm:$0xff] }
 0x1dc   : > { %v1547_v28 = vadd.f32 %v1539_v15, %v3638_v59  ;;  %v1413_v61 = vmul.f32 %v3639_v45, %v3149_v30  ;;  %v1432_v31 = vmul.f32 %v3601_v43, %v1328_v33  ;;  %1968 = vmatprep.mubr.msk.bf16.mxu0 %vm1592_vm3, %v1552_v13  ;;  %v1380_v49 = vadd.f32 %v3641_v29, %v1360_v34  ;;  %v3643_v33 = vld [vmem:[#allocation54_spill] sm:$0xff]  ;;  %v3652_v34 = vld [vmem:[#allocation53_spill] sm:$0xff]  ;;  %v3659_v45 = vld [vmem:[#allocation40_spill] sm:$0xff] }
 0x1dd   : > { %v1546_v63 = vadd.f32 %v1538_v2, %v3640_v23  ;;  %v1433_v21 = vmul.f32 %v3601_v43, %v1329_v54  ;;  %v1460_v22 = vmul.f32 %v2937_v11, %v1305_v40  ;;  %v1389_v44 = vmul.f32 %v1381_v1, %v3642_v26  ;;  %v3656_v2 = vld [vmem:[#allocation21_spill] sm:$0xff] }
 0x1de   : > { %v1421_v46 = vadd.f32 %v1413_v61, %v1401_v9  ;;  %v1461_v4 = vmul.f32 %v2937_v11, %v1306_v62  ;;  %v1472_v37 = vmul.f32 %v2940_v53, %v3149_v30  ;;  %v1440_v8 = vadd.f32 %v1432_v31, %v3643_v33  ;;  %v3648_v62 = vld [vmem:[#allocation48_spill] sm:$0xff]  ;;  %v3655_v9 = vld [vmem:[#allocation29_spill] sm:$0xff] }
 0x1df   : > { %v1553_v18 = vpack.c.bf16 %v1547_v28, %v1546_v63  ;;  %v1354_v10 = vmul.f32 %v3600_v41, %v3149_v30  ;;  %v1363_v32 = vadd.f32 %v3644_v51, %v1343_v24  ;;  %v1492_v57 = vmul.f32 %v2957_v39, %v1329_v54  ;;  %v3649_v30 = vld [vmem:[#allocation46_spill] sm:$0xff]  ;;  %v3657_v1 = vld [vmem:[#allocation49_spill] sm:$0xff]  ;;  %v3664_v51 = vld [vmem:[#allocation51_spill] sm:$0xff] }
 0x1e0   : > { %v1441_v19 = vadd.f32 %v1433_v21, %v1421_v46  ;;  %v1480_v16 = vadd.f32 %v1472_v37, %v1460_v22  ;;  %v1481_v38 = vadd.f32 %v3645_v7, %v1461_v4  ;;  %v1388_v27 = vmul.f32 %v1380_v49, %v3646_v47  ;;  %v3658_v28 = vld [vmem:[#allocation17_spill] sm:$0xff]  ;;  %v3661_v46 = vld [vmem:[#allocation26_spill] sm:$0xff] }
 0x1e1   : > { %1969 = vmatmul.mubr.msk.bf16.vlgmr.msra.gmra.mrb[8].mxu0 %vm1592_vm3, %v1553_v18  ;;  %v1362_v14 = vadd.f32 %v1354_v10, %v1342_v35  ;;  %v1383_v40 = vadd.f32 %v3647_v17, %v1363_v32  ;;  %v1422_v12 = vadd.f32 %v3648_v62, %v1402_v56  ;;  %v1423_v36 = vadd.f32 %v3651_v48, %v3650_v25  ;;  %v3654_v35 = vld [vmem:[#allocation24_spill] sm:$0xff]  ;;  %v3663_v10 = vld [vmem:[#allocation50_spill] sm:$0xff]  ;;  %v3665_v47 = vld [vmem:[#allocation41_spill] sm:$0xff] }
 0x1e2   : > { %v1449_v5 = vadd.f32 %v1441_v19, %v1389_v44  ;;  %v1500_v52 = vadd.f32 %v1492_v57, %v1480_v16  ;;  %v1501_v41 = vadd.f32 %v3649_v30, %v1481_v38  ;;  %v1448_v42 = vadd.f32 %v1440_v8, %v1388_v27  ;;  %v1901_v62 = vld [vmem:[%s3430_s6 + $0x1] ss:$0 sm:$0xff] }
 0x1e3   : > { %v1382_v58 = vadd.f32 %v1374_v50, %v1362_v14  ;;  %v1435_v54 = vmul.f32 %v3601_v43, %v3652_v34  ;;  %v1462_v15 = vmul.f32 %v2937_v11, %v3653_v60  ;;  %v1391_v0 = vmul.f32 %v1383_v40, %v3656_v2  ;;  %v3660_v50 = vld [vmem:[#allocation15_spill] sm:$0xff]  ;;  %v3666_v14 = vld [vmem:[#allocation45_spill] sm:$0xff] }
 0x1e4   : > { %v1508_v24 = vmul.f32 %v1500_v52, %v3654_v35  ;;  %v1509_v13 = vmul.f32 %v1501_v41, %v3655_v9  ;;  %v1475_v59 = vmul.f32 %v2940_v53, %v3657_v1  ;;  %v1442_v61 = vadd.f32 %v3659_v45, %v1422_v12 }
 0x1e5   : > { %v1390_v56 = vmul.f32 %v1382_v58, %v3658_v28  ;;  %v1482_v31 = vadd.f32 %v3660_v50, %v1462_v15  ;;  %v1494_v43 = vmul.f32 %v2957_v39, %v3652_v34  ;;  %v1443_v63 = vadd.f32 %v1435_v54, %v1423_v36  ;;  %v3662_v39 = vld [vmem:[#allocation27_spill] sm:$0xff] }
 0x1e6   : > { %v1516_v23 = vadd.f32 %v1508_v24, %v1448_v42  ;;  %v1517_v11 = vadd.f32 %v1509_v13, %v1449_v5  ;;  %v1483_v29 = vadd.f32 %v1475_v59, %v1463_v20 }
 0x1e7   : > { %v1450_v49 = vadd.f32 %v1442_v61, %v1390_v56  ;;  %v1502_v21 = vadd.f32 %v1494_v43, %v1482_v31  ;;  %v1451_v53 = vadd.f32 %v1443_v63, %v1391_v0 }
 0x1e8   : > { %v1528_v22 = vadd.f32 %v3182_v3, %v1516_v23  ;;  %v1529_v26 = vadd.f32 %v3182_v3, %v1517_v11  ;;  %v1503_v44 = vadd.f32 %v3224_v6, %v1483_v29 }
 0x1e9   : > { %v1510_v4 = vmul.f32 %v1502_v21, %v3661_v46 }
 0x1ea   : > { %v1540_v37 = vmul.f32 %v3193_v55, %v1528_v22  ;;  %v1541_v18 = vmul.f32 %v3193_v55, %v1529_v26  ;;  %v1511_v33 = vmul.f32 %v1503_v44, %v3662_v39 }
 0x1eb   : > { %v1518_v8 = vadd.f32 %v1510_v4, %v1450_v49 }
 0x1ec   : > { %v1548_v20 = vadd.f32 %v1540_v37, %v3663_v10  ;;  %v1549_v32 = vadd.f32 %v1541_v18, %v3664_v51  ;;  %v1519_v19 = vadd.f32 %v1511_v33, %v1451_v53 }
 0x1ed   : > { %v1530_v16 = vadd.f32 %v3182_v3, %v1518_v8 }
 0x1ee   : > { %v1554_v7 = vpack.c.bf16 %v1549_v32, %v1548_v20  ;;  %v1531_v38 = vadd.f32 %v3182_v3, %v1519_v19 }
 0x1ef   : > { %v1542_v6 = vmul.f32 %v3193_v55, %v1530_v16 }
 0x1f0   : > { %1972 = vmatprep.mubr.msk.bf16.mxu1 %vm1592_vm3, %v1554_v7  ;;  %v1543_v57 = vmul.f32 %v3193_v55, %v1531_v38 }
 0x1f1   : > { %v1550_v27 = vadd.f32 %v1542_v6, %v3665_v47 }
 0x1f2   : > { %v1551_v17 = vadd.f32 %v1543_v57, %v3666_v14 }
 0x1f4   : > { %v1555_v40 = vpack.c.bf16 %v1551_v17, %v1550_v27 }
 0x1f6   : > { %1973 = vmatmul.mubr.msk.bf16.vlgmr.msra.gmra.mrb[8].mxu1 %vm1592_vm3, %v1555_v40 }
 0x2b4   : > { %v1970_v12 = vpop.f32.mrb[8].mxu0 }
 0x2b5   : > { %v1648_v5 = vadd.f32 %v1970_v12, %v1901_v62  ;;  %v1639_v3 = vpop.f32.mrb[9].mxu0  ;;  %v3667_v12 = vld [vmem:[#allocation25_spill] sm:$0xff] }
 0x2b6   : > { %v1971_v52 = vpop.f32.mrb[10].mxu0  ;;  %v1640_v30 = vadd.f32 %v1901_v62, %v1639_v3 }
 0x2b7   : > { %v1642_v41 = vpop.f32.mrb[11].mxu0  ;;  %v1676_v25 = vsel %vm353_vm0, %v1648_v5, 0.0  ;;  %v1651_v55 = vadd.f32 %v1971_v52, %v1901_v62 }
 0x2b8   : > { %1677 = vadd.xlane.f32.xlu0 %v1676_v25  ;;  %v1670_v48 = vsel %vm353_vm0, %v1640_v30, 0.0  ;;  %v1643_v15 = vadd.f32 %v1901_v62, %v1642_v41 }
 0x2b9   : > { %v1679_v36 = vsel %vm353_vm0, %v1651_v55, 0.0 }
 0x2ba   : > { %v1673_v0 = vsel %vm353_vm0, %v1643_v15, 0.0 }
 0x2bc   : > { %1671 = vadd.xlane.f32.xlu0 %v1670_v48 }
 0x2c0   : > { %1680 = vadd.xlane.f32.xlu0 %v1679_v36 }
 0x2c9   : > { %v1974_v42 = vpop.f32.mrb[8].mxu1 }
 0x2ca   : > { %v1655_v58 = vpop.f32.mrb[9].mxu1  ;;  %v1664_v2 = vadd.f32 %v1974_v42, %v1901_v62 }
 0x2cb   : > { %v1656_v34 = vadd.f32 %v1901_v62, %v1655_v58  ;;  %v1975_v54 = vpop.f32.mrb[10].mxu1 }
 0x2cc   : > { %v1658_v60 = vpop.f32.mrb[11].mxu1  ;;  %v1667_v9 = vadd.f32 %v1975_v54, %v1901_v62  ;;  %v1688_v59 = vsel %vm353_vm0, %v1664_v2, 0.0 }
 0x2cd   : > { %v1659_v35 = vadd.f32 %v1901_v62, %v1658_v60  ;;  %v1682_v24 = vsel %vm353_vm0, %v1656_v34, 0.0 }
 0x2ce   : > { %1683 = vadd.xlane.f32.xlu1 %v1682_v24  ;;  %v1691_v1 = vsel %vm353_vm0, %v1667_v9, 0.0 }
 0x2cf   : > { %v1685_v13 = vsel %vm353_vm0, %v1659_v35, 0.0 }
 0x2d0   : > { %1686 = vadd.xlane.f32.xlu0 %v1685_v13 }
 0x2d2   : > { %1674 = vadd.xlane.f32.xlu1 %v1673_v0 }
 0x2d4   : > { %1692 = vadd.xlane.f32.xlu0 %v1691_v1 }
 0x2d6   : > { %1689 = vadd.xlane.f32.xlu1 %v1688_v59  ;;  %v3362_v59 = vld [vmem:[%s3430_s6 + $0x3] ss:$0 sm:$0xff] }
 0x345   : > { %v1678_v28 = vpop.xlane.xlu0 %1677 }
 0x346   : > { %v1697_v56 = vmul.f32 0.03125, %v1678_v28 }
 0x348   : > { %v3308_v45 = vsub.f32 %v1648_v5, %v1697_v56  ;;  %v717_v5 = vrot.slane %v3667_v12, 4  ;;  %v3668_v56 = vld [vmem:[#allocation33_spill] sm:$0xff] }
 0x349   : > { %v1672_v61 = vpop.xlane.xlu0 %1671 }
 0x34a   : > { %v1713_v50 = vmul.f32 %v3308_v45, %v3308_v45  ;;  %v1695_v49 = vmul.f32 0.03125, %v1672_v61  ;;  %v718_v3 = vadd.f32 %v717_v5, %v3667_v12 }
 0x34c   : > { %v1725_v31 = vsel %vm353_vm0, %v1713_v50, 0.0  ;;  %v3318_v26 = vsub.f32 %v1640_v30, %v1695_v49  ;;  %v719_v52 = vrot.slane %v718_v3, 2 }
 0x34d   : > { %v1681_v43 = vpop.xlane.xlu0 %1680  ;;  %1726 = vadd.xlane.f32.xlu1 %v1725_v31 }
 0x34e   : > { %v1698_v23 = vmul.f32 0.03125, %v1681_v43  ;;  %v1711_v8 = vmul.f32 %v3318_v26, %v3318_v26  ;;  %v720_v30 = vadd.f32 %v719_v52, %v718_v3 }
 0x350   : > { %v3313_v11 = vsub.f32 %v1651_v55, %v1698_v23  ;;  %v1719_v47 = vsel %vm353_vm0, %v1711_v8, 0.0  ;;  %v721_v41 = vrot.slane %v720_v30, 1 }
 0x352   : > { %v1714_v63 = vmul.f32 %v3313_v11, %v3313_v11  ;;  %v722_v25 = vadd.f32 %v721_v41, %v720_v30 }
 0x354   : > { %v1728_v29 = vsel %vm353_vm0, %v1714_v63, 0.0  ;;  %v723_v55 = vsub.f32 0.0, %v722_v25 }
 0x355   : > { %1729 = vadd.xlane.f32.xlu0 %v1728_v29 }
 0x356   : > { %v724_v48 = vmul.f32 1.442695, %v723_v55 }
 0x358   : > { %2066 = vpow2.f32 %v724_v48 }
 0x35b   : > { %v1684_v21 = vpop.xlane.xlu1 %1683 }
 0x35c   : > { %v1699_v22 = vmul.f32 0.03125, %v1684_v21 }
 0x35d   : > { %v1687_v53 = vpop.xlane.xlu0 %1686 }
 0x35e   : > { %v3320_v44 = vsub.f32 %v1656_v34, %v1699_v22  ;;  %v1700_v46 = vmul.f32 0.03125, %v1687_v53 }
 0x35f   : > { %v1675_v4 = vpop.xlane.xlu1 %1674 }
 0x360   : > { %v1696_v37 = vmul.f32 0.03125, %v1675_v4  ;;  %v3322_v18 = vsub.f32 %v1659_v35, %v1700_v46  ;;  %v1715_v39 = vmul.f32 %v3320_v44, %v3320_v44 }
 0x361   : > { %v1693_v33 = vpop.xlane.xlu0 %1692 }
 0x362   : > { %v3328_v10 = vsub.f32 %v1643_v15, %v1696_v37  ;;  %v1731_v20 = vsel %vm353_vm0, %v1715_v39, 0.0  ;;  %v1702_v51 = vmul.f32 0.03125, %v1693_v33  ;;  %v1716_v32 = vmul.f32 %v3322_v18, %v3322_v18  ;;  %v2067_v36 = vpop.eup %2066 }
 0x363   : > { %v1690_v19 = vpop.xlane.xlu1 %1689  ;;  %1732 = vadd.xlane.f32.xlu1 %v1731_v20  ;;  %v726_v42 = vadd.f32 1.0, %v2067_v36 }
 0x364   : > { %v1701_v16 = vmul.f32 0.03125, %v1690_v19  ;;  %v3333_v7 = vsub.f32 %v1667_v9, %v1702_v51  ;;  %v1734_v38 = vsel %vm353_vm0, %v1716_v32, 0.0  ;;  %v1712_v6 = vmul.f32 %v3328_v10, %v3328_v10  ;;  %v321_v9 = vld [vmem:[%s3430_s6] sm:$0x1] }
 0x365   : > { %1735 = vadd.xlane.f32.xlu0 %v1734_v38  ;;  %2068 = vrcp.f32 %v726_v42 }
 0x366   : > { %v3338_v57 = vsub.f32 %v1664_v2, %v1701_v16  ;;  %v1722_v14 = vsel %vm353_vm0, %v1712_v6, 0.0  ;;  %v1718_v17 = vmul.f32 %v3333_v7, %v3333_v7  ;;  %v3356_v2 = vld [vmem:[%s3430_s6 + $0x2] ss:$0 sm:$0xff] }
 0x367   : > { %1720 = vadd.xlane.f32.xlu1 %v1719_v47 }
 0x368   : > { %v1717_v27 = vmul.f32 %v3338_v57, %v3338_v57  ;;  %v1740_v62 = vsel %vm353_vm0, %v1718_v17, 0.0 }
 0x369   : > { %1723 = vadd.xlane.f32.xlu0 %v1722_v14 }
 0x36a   : > { %v1737_v40 = vsel %vm353_vm0, %v1717_v27, 0.0 }
 0x36b   : > { %1738 = vadd.xlane.f32.xlu1 %v1737_v40 }
 0x36d   : > { %1741 = vadd.xlane.f32.xlu0 %v1740_v62 }
 0x36f   : > { %v2069_v24 = vpop.eup %2068 }
 0x370   : > { %v728_v0 = vmul.f32 %v2069_v24, %v321_v9 }
 0x372   : > { %v3366_v61 = vrot.slane %v728_v0, %v3668_v56 }
 0x3da   : > { %v1727_v58 = vpop.xlane.xlu1 %1726 }
 0x3db   : > { %v1745_v34 = vmul.f32 0.03125, %v1727_v58 }
 0x3dd   : > { %v1753_v54 = vadd.f32 1e-05, %v1745_v34 }
 0x3df   : > { %2070 = vrsqrt.f32 %v1753_v54 }
 0x3e2   : > { %v1730_v60 = vpop.xlane.xlu0 %1729 }
 0x3e3   : > { %v1746_v15 = vmul.f32 0.03125, %v1730_v60 }
 0x3e5   : > { %v1754_v35 = vadd.f32 1e-05, %v1746_v15 }
 0x3e7   : > { %2072 = vrsqrt.f32 %v1754_v35 }
 0x3e9   : > { %v2071_v13 = vpop.eup %2070 }
 0x3ea   : > { %v1769_v1 = vmul.f32 %v2071_v13, %v3308_v45 }
 0x3ec   : > { %v1781_v28 = vmul.f32 %v3356_v2, %v1769_v1 }
 0x3ee   : > { %v1793_v50 = vadd.f32 %v3362_v59, %v1781_v28 }
 0x3f0   : > { %v1805_v45 = vmul.f32 %v3366_v61, %v1793_v50  ;;  %v1733_v31 = vpop.xlane.xlu1 %1732 }
 0x3f1   : > { %v2073_v43 = vpop.eup %2072  ;;  %v1747_v23 = vmul.f32 0.03125, %v1733_v31 }
 0x3f2   : > { %1813 = vst.msk [vmem:[%s3374_s16 + $0x10] sm:$0xff] %vm353_vm0, %v1805_v45  ;;  %v1770_v63 = vmul.f32 %v2073_v43, %v3313_v11  ;;  %v1736_v29 = vpop.xlane.xlu0 %1735 }
 0x3f3   : > { %v1755_v49 = vadd.f32 1e-05, %v1747_v23  ;;  %v1748_v21 = vmul.f32 0.03125, %v1736_v29 }
 0x3f4   : > { %v1782_v22 = vmul.f32 %v3356_v2, %v1770_v63  ;;  %v1721_v53 = vpop.xlane.xlu1 %1720 }
 0x3f5   : > { %2074 = vrsqrt.f32 %v1755_v49  ;;  %v1743_v46 = vmul.f32 0.03125, %v1721_v53  ;;  %v1756_v4 = vadd.f32 1e-05, %v1748_v21 }
 0x3f6   : > { %v1794_v37 = vadd.f32 %v3362_v59, %v1782_v22  ;;  %v1724_v39 = vpop.xlane.xlu0 %1723 }
 0x3f7   : > { %v1751_v33 = vadd.f32 1e-05, %v1743_v46  ;;  %2076 = vrsqrt.f32 %v1756_v4  ;;  %v1744_v8 = vmul.f32 0.03125, %v1724_v39 }
 0x3f8   : > { %v1806_v20 = vmul.f32 %v3366_v61, %v1794_v37  ;;  %v1739_v51 = vpop.xlane.xlu1 %1738 }
 0x3f9   : > { %2078 = vrsqrt.f32 %v1751_v33  ;;  %v1749_v11 = vmul.f32 0.03125, %v1739_v51  ;;  %v1752_v32 = vadd.f32 1e-05, %v1744_v8 }
 0x3fa   : > { %1814 = vst.msk [vmem:[%s3374_s16 + $0x18] sm:$0xff] %vm353_vm0, %v1806_v20  ;;  %v1742_v19 = vpop.xlane.xlu0 %1741 }
 0x3fb   : > { %v1757_v16 = vadd.f32 1e-05, %v1749_v11  ;;  %2080 = vrsqrt.f32 %v1752_v32  ;;  %v1750_v38 = vmul.f32 0.03125, %v1742_v19 }
 0x3fd   : > { %2082 = vrsqrt.f32 %v1757_v16  ;;  %v1758_v6 = vadd.f32 1e-05, %v1750_v38 }
 0x3ff   : > { %v2075_v47 = vpop.eup %2074  ;;  %2084 = vrsqrt.f32 %v1758_v6 }
 0x400   : > { %v1771_v27 = vmul.f32 %v2075_v47, %v3320_v44 }
 0x401   : > { %v2077_v14 = vpop.eup %2076 }
 0x402   : > { %v1783_v17 = vmul.f32 %v3356_v2, %v1771_v27  ;;  %v1772_v40 = vmul.f32 %v2077_v14, %v3322_v18 }
 0x403   : > { %v2079_v62 = vpop.eup %2078 }
 0x404   : > { %v1795_v12 = vadd.f32 %v3362_v59, %v1783_v17  ;;  %v1767_v5 = vmul.f32 %v2079_v62, %v3318_v26  ;;  %v1784_v3 = vmul.f32 %v3356_v2, %v1772_v40 }
 0x405   : > { %v2081_v52 = vpop.eup %2080 }
 0x406   : > { %v1807_v30 = vmul.f32 %v3366_v61, %v1795_v12  ;;  %v1779_v41 = vmul.f32 %v3356_v2, %v1767_v5  ;;  %v1796_v44 = vadd.f32 %v3362_v59, %v1784_v3  ;;  %v1768_v25 = vmul.f32 %v2081_v52, %v3328_v10 }
 0x407   : > { %v2083_v55 = vpop.eup %2082 }
 0x408   : > { %1815 = vst.msk [vmem:[%s3374_s16 + $0x20] sm:$0xff] %vm353_vm0, %v1807_v30  ;;  %v1791_v18 = vadd.f32 %v3362_v59, %v1779_v41  ;;  %v1808_v26 = vmul.f32 %v3366_v61, %v1796_v44  ;;  %v1773_v48 = vmul.f32 %v2083_v55, %v3338_v57  ;;  %v1780_v36 = vmul.f32 %v3356_v2, %v1768_v25 }
 0x409   : > { %v2085_v42 = vpop.eup %2084 }
 0x40a   : > { %v1803_v58 = vmul.f32 %v3366_v61, %v1791_v18  ;;  %1816 = vst.msk [vmem:[%s3374_s16 + $0x28] sm:$0xff] %vm353_vm0, %v1808_v26  ;;  %v1785_v10 = vmul.f32 %v3356_v2, %v1773_v48  ;;  %v1792_v34 = vadd.f32 %v3362_v59, %v1780_v36  ;;  %v1774_v54 = vmul.f32 %v2085_v42, %v3333_v7 }
 0x40c   : > { %1811 = vst.msk [vmem:[%s3374_s16] sm:$0xff] %vm353_vm0, %v1803_v58  ;;  %v1797_v60 = vadd.f32 %v3362_v59, %v1785_v10  ;;  %v1804_v57 = vmul.f32 %v3366_v61, %v1792_v34  ;;  %v1786_v15 = vmul.f32 %v3356_v2, %v1774_v54 }
 0x40e   : > { %v1809_v35 = vmul.f32 %v3366_v61, %v1797_v60  ;;  %1812 = vst.msk [vmem:[%s3374_s16 + $0x8] sm:$0xff] %vm353_vm0, %v1804_v57  ;;  %v1798_v24 = vadd.f32 %v3362_v59, %v1786_v15 }
 0x410   : > { %1817 = vst.msk [vmem:[%s3374_s16 + $0x30] sm:$0xff] %vm353_vm0, %v1809_v35  ;;  %v1810_v9 = vmul.f32 %v3366_v61, %v1798_v24 }
 0x412   : > { %1818 = vst.msk [vmem:[%s3374_s16 + $0x38] sm:$0xff] %vm353_vm0, %v1810_v9 }
 0x413 PF: > { %s18_s27 = sadd.s32 1, %s2092_s27  }
 0x414   : > { %p15_p4 = scmp.ge.s32.totalorder %s18_s27, 4  }
 0x416   :  { %17 = sbr.rel (!%p15_p4) target bundleno = 1 (0x1), region = 82 }

</bundles_post_ra>
